<compile_context>
chip_gen: v5e
topology: v5e:2x2
jax: 0.10.0
libtpu: 0.0.40
codegen_flags: <defaults>
</compile_context>

<pallas_src>
import functools

import jax
import jax.numpy as jnp
from jax.experimental import pallas as pl
from jax.experimental.pallas import tpu as pltpu

_NEG_BIG = -1e30  # mask value for padded class columns (finite -> no NaNs)


# ----------------------------------------------------------------------------
# Fused VAT kernel.
#   inputs : x_flat (B,D) f32, noise (B,D) f32, W (D,Kp) bf16, b (1,Kp) f32
#   output : loss (1,1) f32
#   scratch: r (B,D) f32, logp (B,Kp) f32   -- resident across power iteration
# ----------------------------------------------------------------------------
def _vat_kernel(x_ref, noise_ref, w_ref, b_ref, loss_ref, r_ref, logp_ref,
                *, xi, eps, vat_iter, n_classes, batch):
    kp = w_ref.shape[1]
    # Mask for the zero-padded class columns (lane-dense Kp >= n_classes).
    class_ids = jax.lax.broadcasted_iota(jnp.int32, (1, kp), 1)
    valid = class_ids < n_classes

    def log_softmax_logits(xp_f32):
        # bf16 MXU matmul, f32 accumulation; elementwise math in f32.
        logits = jnp.dot(xp_f32.astype(jnp.bfloat16), w_ref[...],
                         preferred_element_type=jnp.float32) + b_ref[...]
        logits = jnp.where(valid, logits, jnp.float32(_NEG_BIG))
        m = jnp.max(logits, axis=-1, keepdims=True)
        lse = jnp.log(jnp.sum(jnp.exp(logits - m), axis=-1, keepdims=True)) + m
        return logits - lse

    def l2_normalize(v):
        # arr / (||arr||_2 + 1e-7), norm per sample over the flattened dims.
        nrm = jnp.sqrt(jnp.sum(v * v, axis=-1, keepdims=True))
        return v * pl.reciprocal(nrm + jnp.float32(1e-7), approx=True)

    x = x_ref[...]

    # r = l2_norm(N(0,1) noise)
    r_ref[...] = l2_normalize(noise_ref[...])

    # pred = log_softmax(model(x)), treated as a constant (torch.no_grad()).
    logp_ref[...] = log_softmax_logits(x)

    # Power iteration on r (vat_iter is a small static int).
    coef = jnp.float32(xi / batch)
    for _ in range(vat_iter):
        logq = log_softmax_logits(x + jnp.float32(xi) * r_ref[...])
        # d KL(batchmean, log_target) / d logits_adv = (q - p) / B ;  * xi chain
        delta = (jnp.exp(logq) - jnp.exp(logp_ref[...])) * coef
        # g = delta @ W^T without materializing W^T (contract the class dims).
        g = jax.lax.dot_general(
            delta.astype(jnp.bfloat16), w_ref[...],
            dimension_numbers=(((1,), (1,)), ((), ())),
            preferred_element_type=jnp.float32)
        r_ref[...] = l2_normalize(g)

    # Final adversarial pass: x_adv = x + eps * r.
    logq_adv = log_softmax_logits(x + jnp.float32(eps) * r_ref[...])

    # F.kl_div(pred_adv, pred, reduction='batchmean', log_target=True)
    #   = (1/B) * sum_{b,c} exp(logp) * (logp - logq_adv)
    logp = logp_ref[...]
    p = jnp.exp(logp)
    per_row = jnp.sum(p * (logp - logq_adv), axis=-1, keepdims=True)   # (B,1)
    loss_ref[...] = jnp.sum(per_row, axis=0, keepdims=True) / jnp.float32(batch)


# ----------------------------------------------------------------------------
# VATLoss.forward wrapper
# ----------------------------------------------------------------------------
def vat_loss(x, w, b, noise_key, *, xi, eps, vat_iter):
    B, C, H, W_ = x.shape
    D = C * H * W_
    K = w.shape[1]
    Kp = pl.cdiv(K, 128) * 128            # lane-dense class dim

    x_flat = x.reshape(B, D).astype(jnp.float32)
    noise = jax.random.normal(noise_key, (B, D), dtype=jnp.float32)

    # Zero-pad the class dim; padded columns are masked inside the kernel.
    w_p = jnp.zeros((D, Kp), jnp.bfloat16).at[:, :K].set(w.astype(jnp.bfloat16))
    b_p = jnp.zeros((1, Kp), jnp.float32).at[:, :K].set(
        b.reshape(1, K).astype(jnp.float32))

    kernel = functools.partial(
        _vat_kernel, xi=float(xi), eps=float(eps), vat_iter=int(vat_iter),
        n_classes=int(K), batch=int(B))

    out = pl.pallas_call(
        kernel,
        out_shape=jax.ShapeDtypeStruct((1, 1), jnp.float32),
        in_specs=[
            pl.BlockSpec(memory_space=pltpu.MemorySpace.VMEM),   # x_flat
            pl.BlockSpec(memory_space=pltpu.MemorySpace.VMEM),   # noise
            pl.BlockSpec(memory_space=pltpu.MemorySpace.VMEM),   # W (bf16, padded)
            pl.BlockSpec(memory_space=pltpu.MemorySpace.VMEM),   # b (padded)
        ],
        out_specs=pl.BlockSpec(memory_space=pltpu.MemorySpace.VMEM),
        scratch_shapes=[
            pltpu.VMEM((B, D), jnp.float32),    # r (resident across iterations)
            pltpu.VMEM((B, Kp), jnp.float32),   # logp (clean log-probs)
        ],
    )(x_flat, noise, w_p, b_p)
    return out[0, 0]


if __name__ == "__main__":
    key = jax.random.PRNGKey(0)
    kx, kw, kn = jax.random.split(key, 3)

    # Small shapes consistent with the module's NCHW image input.
    B, C, H, W_ = 2, 4, 16, 16
    K = 10                      # num classes of the synthetic linear model
    D = C * H * W_

    x = jax.random.normal(kx, (B, C, H, W_), dtype=jnp.float32)
    # Deterministic synthetic "model" parameters: logits = flatten(x) @ W + b.
    w = jax.random.normal(kw, (D, K), dtype=jnp.float32) * 0.05
    b = jnp.zeros((1, K), dtype=jnp.float32)

    fn = jax.jit(functools.partial(vat_loss, xi=10.0, eps=1.0, vat_iter=1))
    loss = fn(x, w, b, kn)
    jax.block_until_ready(loss)
    print("KERNEL_OK")
</pallas_src>

<mosaic_0001>
module attributes {stable_mosaic.version = 11 : i64} {
  func.func @_vat_kernel(%arg0: memref<2x1024xf32, #tpu.memory_space<vmem>>, %arg1: memref<2x1024xf32, #tpu.memory_space<vmem>>, %arg2: memref<1024x128xbf16, #tpu.memory_space<vmem>>, %arg3: memref<1x128xf32, #tpu.memory_space<vmem>>, %arg4: memref<1x1xf32, #tpu.memory_space<vmem>>, %arg5: memref<2x1024xf32, #tpu.memory_space<vmem>>, %arg6: memref<2x128xf32, #tpu.memory_space<vmem>>) attributes {dimension_semantics = [], scalar_prefetch = 0 : i64, scratch_operands = 2 : i64, tpu.core_type = #tpu.core_type<tc>} {
    %0 = tpu.iota {dimensions = array<i32: 1>} : vector<1x128xi32>
    %c10_i32 = arith.constant 10 : i32
    %1 = vector.broadcast %c10_i32 : i32 to vector<1x128xi32>
    %2 = arith.cmpi slt, %0, %1 : vector<1x128xi32>
    %c0 = arith.constant 0 : index
    %c0_0 = arith.constant 0 : index
    %3 = vector.load %arg0[%c0, %c0_0] : memref<2x1024xf32, #tpu.memory_space<vmem>>, vector<2x1024xf32>
    %c0_1 = arith.constant 0 : index
    %c0_2 = arith.constant 0 : index
    %4 = vector.load %arg1[%c0_1, %c0_2] : memref<2x1024xf32, #tpu.memory_space<vmem>>, vector<2x1024xf32>
    %5 = arith.mulf %4, %4 : vector<2x1024xf32>
    %cst = arith.constant dense<0.000000e+00> : vector<2xf32>
    %6 = vector.multi_reduction <add>, %5, %cst [1] : vector<2x1024xf32> to vector<2xf32>
    %7 = vector.shape_cast %6 : vector<2xf32> to vector<2x1xf32>
    %8 = math.sqrt %7 : vector<2x1xf32>
    %cst_3 = arith.constant 1.000000e-07 : f32
    %9 = vector.broadcast %cst_3 : f32 to vector<2x1xf32>
    %10 = arith.addf %8, %9 : vector<2x1xf32>
    %11 = tpu.reciprocal %10 {approx = true} : vector<2x1xf32> -> vector<2x1xf32>
    %12 = vector.broadcast %11 : vector<2x1xf32> to vector<2x1024xf32>
    %13 = arith.mulf %4, %12 : vector<2x1024xf32>
    %c0_4 = arith.constant 0 : index
    %c0_5 = arith.constant 0 : index
    %14 = vector.load %arg5[%c0_4, %c0_5] : memref<2x1024xf32, #tpu.memory_space<vmem>>, vector<2x1024xf32>
    tpu.vector_store %arg5[%c0_4, %c0_5], %13 {strides = array<i32>} : memref<2x1024xf32, #tpu.memory_space<vmem>>, vector<2x1024xf32>,
    %15 = arith.truncf %3 : vector<2x1024xf32> to vector<2x1024xbf16>
    %c0_6 = arith.constant 0 : index
    %c0_7 = arith.constant 0 : index
    %16 = vector.load %arg2[%c0_6, %c0_7] : memref<1024x128xbf16, #tpu.memory_space<vmem>>, vector<1024x128xbf16>
    %cst_8 = arith.constant dense<0.000000e+00> : vector<2x128xf32>
    %17 = tpu.matmul %15, %16, %cst_8 {dimension_numbers = #tpu.dot_dimension_numbers<[1], [0], [0], [1], [0, 0, 1, 1], [], []>} : vector<2x1024xbf16>, vector<1024x128xbf16>, vector<2x128xf32> -> vector<2x128xf32>
    %c0_9 = arith.constant 0 : index
    %c0_10 = arith.constant 0 : index
    %18 = vector.load %arg3[%c0_9, %c0_10] : memref<1x128xf32, #tpu.memory_space<vmem>>, vector<1x128xf32>
    %19 = vector.broadcast %18 : vector<1x128xf32> to vector<2x128xf32>
    %20 = arith.addf %17, %19 : vector<2x128xf32>
    %cst_11 = arith.constant -1.000000e+30 : f32
    %21 = vector.shape_cast %2 : vector<1x128xi1> to vector<1x128xi1>
    %22 = vector.broadcast %21 : vector<1x128xi1> to vector<2x128xi1>
    %23 = vector.broadcast %cst_11 : f32 to vector<2x128xf32>
    %24 = arith.select %22, %20, %23 : vector<2x128xi1>, vector<2x128xf32>
    %cst_12 = arith.constant dense<0xFF800000> : vector<2xf32>
    %25 = vector.multi_reduction <maximumf>, %24, %cst_12 [1] : vector<2x128xf32> to vector<2xf32>
    %26 = vector.shape_cast %25 : vector<2xf32> to vector<2x1xf32>
    %27 = vector.broadcast %26 : vector<2x1xf32> to vector<2x128xf32>
    %28 = arith.subf %24, %27 : vector<2x128xf32>
    %29 = math.exp %28 : vector<2x128xf32>
    %cst_13 = arith.constant dense<0.000000e+00> : vector<2xf32>
    %30 = vector.multi_reduction <add>, %29, %cst_13 [1] : vector<2x128xf32> to vector<2xf32>
    %31 = vector.shape_cast %30 : vector<2xf32> to vector<2x1xf32>
    %32 = math.log %31 : vector<2x1xf32>
    %33 = arith.addf %32, %26 : vector<2x1xf32>
    %34 = vector.broadcast %33 : vector<2x1xf32> to vector<2x128xf32>
    %35 = arith.subf %24, %34 : vector<2x128xf32>
    %c0_14 = arith.constant 0 : index
    %c0_15 = arith.constant 0 : index
    %36 = vector.load %arg6[%c0_14, %c0_15] : memref<2x128xf32, #tpu.memory_space<vmem>>, vector<2x128xf32>
    tpu.vector_store %arg6[%c0_14, %c0_15], %35 {strides = array<i32>} : memref<2x128xf32, #tpu.memory_space<vmem>>, vector<2x128xf32>,
    %c0_16 = arith.constant 0 : index
    %c0_17 = arith.constant 0 : index
    %37 = vector.load %arg5[%c0_16, %c0_17] : memref<2x1024xf32, #tpu.memory_space<vmem>>, vector<2x1024xf32>
    %cst_18 = arith.constant 1.000000e+01 : f32
    %38 = vector.broadcast %cst_18 : f32 to vector<2x1024xf32>
    %39 = arith.mulf %38, %37 : vector<2x1024xf32>
    %40 = arith.addf %3, %39 : vector<2x1024xf32>
    %41 = arith.truncf %40 : vector<2x1024xf32> to vector<2x1024xbf16>
    %c0_19 = arith.constant 0 : index
    %c0_20 = arith.constant 0 : index
    %42 = vector.load %arg2[%c0_19, %c0_20] : memref<1024x128xbf16, #tpu.memory_space<vmem>>, vector<1024x128xbf16>
    %cst_21 = arith.constant dense<0.000000e+00> : vector<2x128xf32>
    %43 = tpu.matmul %41, %42, %cst_21 {dimension_numbers = #tpu.dot_dimension_numbers<[1], [0], [0], [1], [0, 0, 1, 1], [], []>} : vector<2x1024xbf16>, vector<1024x128xbf16>, vector<2x128xf32> -> vector<2x128xf32>
    %c0_22 = arith.constant 0 : index
    %c0_23 = arith.constant 0 : index
    %44 = vector.load %arg3[%c0_22, %c0_23] : memref<1x128xf32, #tpu.memory_space<vmem>>, vector<1x128xf32>
    %45 = vector.broadcast %44 : vector<1x128xf32> to vector<2x128xf32>
    %46 = arith.addf %43, %45 : vector<2x128xf32>
    %cst_24 = arith.constant -1.000000e+30 : f32
    %47 = vector.shape_cast %2 : vector<1x128xi1> to vector<1x128xi1>
    %48 = vector.broadcast %47 : vector<1x128xi1> to vector<2x128xi1>
    %49 = vector.broadcast %cst_24 : f32 to vector<2x128xf32>
    %50 = arith.select %48, %46, %49 : vector<2x128xi1>, vector<2x128xf32>
    %cst_25 = arith.constant dense<0xFF800000> : vector<2xf32>
    %51 = vector.multi_reduction <maximumf>, %50, %cst_25 [1] : vector<2x128xf32> to vector<2xf32>
    %52 = vector.shape_cast %51 : vector<2xf32> to vector<2x1xf32>
    %53 = vector.broadcast %52 : vector<2x1xf32> to vector<2x128xf32>
    %54 = arith.subf %50, %53 : vector<2x128xf32>
    %55 = math.exp %54 : vector<2x128xf32>
    %cst_26 = arith.constant dense<0.000000e+00> : vector<2xf32>
    %56 = vector.multi_reduction <add>, %55, %cst_26 [1] : vector<2x128xf32> to vector<2xf32>
    %57 = vector.shape_cast %56 : vector<2xf32> to vector<2x1xf32>
    %58 = math.log %57 : vector<2x1xf32>
    %59 = arith.addf %58, %52 : vector<2x1xf32>
    %60 = vector.broadcast %59 : vector<2x1xf32> to vector<2x128xf32>
    %61 = arith.subf %50, %60 : vector<2x128xf32>
    %62 = math.exp %61 : vector<2x128xf32>
    %c0_27 = arith.constant 0 : index
    %c0_28 = arith.constant 0 : index
    %63 = vector.load %arg6[%c0_27, %c0_28] : memref<2x128xf32, #tpu.memory_space<vmem>>, vector<2x128xf32>
    %64 = math.exp %63 : vector<2x128xf32>
    %65 = arith.subf %62, %64 : vector<2x128xf32>
    %cst_29 = arith.constant 5.000000e+00 : f32
    %66 = vector.broadcast %cst_29 : f32 to vector<2x128xf32>
    %67 = arith.mulf %65, %66 : vector<2x128xf32>
    %68 = arith.truncf %67 : vector<2x128xf32> to vector<2x128xbf16>
    %c0_30 = arith.constant 0 : index
    %c0_31 = arith.constant 0 : index
    %69 = vector.load %arg2[%c0_30, %c0_31] : memref<1024x128xbf16, #tpu.memory_space<vmem>>, vector<1024x128xbf16>
    %cst_32 = arith.constant dense<0.000000e+00> : vector<2x1024xf32>
    %70 = tpu.matmul %68, %69, %cst_32 {dimension_numbers = #tpu.dot_dimension_numbers<[1], [1], [0], [0], [0, 0, 1, 0], [], []>} : vector<2x128xbf16>, vector<1024x128xbf16>, vector<2x1024xf32> -> vector<2x1024xf32>
    %71 = arith.mulf %70, %70 : vector<2x1024xf32>
    %cst_33 = arith.constant dense<0.000000e+00> : vector<2xf32>
    %72 = vector.multi_reduction <add>, %71, %cst_33 [1] : vector<2x1024xf32> to vector<2xf32>
    %73 = vector.shape_cast %72 : vector<2xf32> to vector<2x1xf32>
    %74 = math.sqrt %73 : vector<2x1xf32>
    %cst_34 = arith.constant 1.000000e-07 : f32
    %75 = vector.broadcast %cst_34 : f32 to vector<2x1xf32>
    %76 = arith.addf %74, %75 : vector<2x1xf32>
    %77 = tpu.reciprocal %76 {approx = true} : vector<2x1xf32> -> vector<2x1xf32>
    %78 = vector.broadcast %77 : vector<2x1xf32> to vector<2x1024xf32>
    %79 = arith.mulf %70, %78 : vector<2x1024xf32>
    %c0_35 = arith.constant 0 : index
    %c0_36 = arith.constant 0 : index
    %80 = vector.load %arg5[%c0_35, %c0_36] : memref<2x1024xf32, #tpu.memory_space<vmem>>, vector<2x1024xf32>
    tpu.vector_store %arg5[%c0_35, %c0_36], %79 {strides = array<i32>} : memref<2x1024xf32, #tpu.memory_space<vmem>>, vector<2x1024xf32>,
    %c0_37 = arith.constant 0 : index
    %c0_38 = arith.constant 0 : index
    %81 = vector.load %arg5[%c0_37, %c0_38] : memref<2x1024xf32, #tpu.memory_space<vmem>>, vector<2x1024xf32>
    %cst_39 = arith.constant 1.000000e+00 : f32
    %82 = vector.broadcast %cst_39 : f32 to vector<2x1024xf32>
    %83 = arith.mulf %82, %81 : vector<2x1024xf32>
    %84 = arith.addf %3, %83 : vector<2x1024xf32>
    %85 = arith.truncf %84 : vector<2x1024xf32> to vector<2x1024xbf16>
    %c0_40 = arith.constant 0 : index
    %c0_41 = arith.constant 0 : index
    %86 = vector.load %arg2[%c0_40, %c0_41] : memref<1024x128xbf16, #tpu.memory_space<vmem>>, vector<1024x128xbf16>
    %cst_42 = arith.constant dense<0.000000e+00> : vector<2x128xf32>
    %87 = tpu.matmul %85, %86, %cst_42 {dimension_numbers = #tpu.dot_dimension_numbers<[1], [0], [0], [1], [0, 0, 1, 1], [], []>} : vector<2x1024xbf16>, vector<1024x128xbf16>, vector<2x128xf32> -> vector<2x128xf32>
    %c0_43 = arith.constant 0 : index
    %c0_44 = arith.constant 0 : index
    %88 = vector.load %arg3[%c0_43, %c0_44] : memref<1x128xf32, #tpu.memory_space<vmem>>, vector<1x128xf32>
    %89 = vector.broadcast %88 : vector<1x128xf32> to vector<2x128xf32>
    %90 = arith.addf %87, %89 : vector<2x128xf32>
    %cst_45 = arith.constant -1.000000e+30 : f32
    %91 = vector.shape_cast %2 : vector<1x128xi1> to vector<1x128xi1>
    %92 = vector.broadcast %91 : vector<1x128xi1> to vector<2x128xi1>
    %93 = vector.broadcast %cst_45 : f32 to vector<2x128xf32>
    %94 = arith.select %92, %90, %93 : vector<2x128xi1>, vector<2x128xf32>
    %cst_46 = arith.constant dense<0xFF800000> : vector<2xf32>
    %95 = vector.multi_reduction <maximumf>, %94, %cst_46 [1] : vector<2x128xf32> to vector<2xf32>
    %96 = vector.shape_cast %95 : vector<2xf32> to vector<2x1xf32>
    %97 = vector.broadcast %96 : vector<2x1xf32> to vector<2x128xf32>
    %98 = arith.subf %94, %97 : vector<2x128xf32>
    %99 = math.exp %98 : vector<2x128xf32>
    %cst_47 = arith.constant dense<0.000000e+00> : vector<2xf32>
    %100 = vector.multi_reduction <add>, %99, %cst_47 [1] : vector<2x128xf32> to vector<2xf32>
    %101 = vector.shape_cast %100 : vector<2xf32> to vector<2x1xf32>
    %102 = math.log %101 : vector<2x1xf32>
    %103 = arith.addf %102, %96 : vector<2x1xf32>
    %104 = vector.broadcast %103 : vector<2x1xf32> to vector<2x128xf32>
    %105 = arith.subf %94, %104 : vector<2x128xf32>
    %c0_48 = arith.constant 0 : index
    %c0_49 = arith.constant 0 : index
    %106 = vector.load %arg6[%c0_48, %c0_49] : memref<2x128xf32, #tpu.memory_space<vmem>>, vector<2x128xf32>
    %107 = math.exp %106 : vector<2x128xf32>
    %108 = arith.subf %106, %105 : vector<2x128xf32>
    %109 = arith.mulf %107, %108 : vector<2x128xf32>
    %cst_50 = arith.constant dense<0.000000e+00> : vector<2xf32>
    %110 = vector.multi_reduction <add>, %109, %cst_50 [1] : vector<2x128xf32> to vector<2xf32>
    %111 = vector.shape_cast %110 : vector<2xf32> to vector<2x1xf32>
    %cst_51 = arith.constant dense<0.000000e+00> : vector<1xf32>
    %112 = vector.multi_reduction <add>, %111, %cst_51 [0] : vector<2x1xf32> to vector<1xf32>
    %113 = vector.shape_cast %112 : vector<1xf32> to vector<1x1xf32>
    %cst_52 = arith.constant 2.000000e+00 : f32
    %114 = vector.broadcast %cst_52 : f32 to vector<1x1xf32>
    %115 = arith.divf %113, %114 : vector<1x1xf32>
    %c0_53 = arith.constant 0 : index
    %c0_54 = arith.constant 0 : index
    %116 = vector.load %arg4[%c0_53, %c0_54] : memref<1x1xf32, #tpu.memory_space<vmem>>, vector<1x1xf32>
    tpu.vector_store %arg4[%c0_53, %c0_54], %115 {strides = array<i32>} : memref<1x1xf32, #tpu.memory_space<vmem>>, vector<1x1xf32>,
    return
  }
}

</mosaic_0001>

<bundles_post_ra>
// kernel: vat_loss.1
= control target key start
LH: loop header
LB: loop body
LE: loop exit
PB: predicated region body
PF: predicated region fallthrough
CT: control target
= control target key end

     0   :  { %vm48_vm0 = vcmask 1041408   ;;  %s4335_s0 = inlined_call_operand.vmem [shape: f32[2,1024], index: 0, kind: input, shape index: {}]   ;;  %s4336_s1 = inlined_call_operand.vmem [shape: f32[2,1024], index: 1, kind: input, shape index: {}]   ;;  %s4337_s2 = inlined_call_operand.vmem [shape: bf16[1024,128], index: 2, kind: input, shape index: {}]   ;;  %s4338_s3 = inlined_call_operand.vmem [shape: f32[1,128], index: 3, kind: input, shape index: {}]   ;;  %s4339_s4 = inlined_call_operand.hbm [shape: f32[1,1], index: 4, kind: output, shape index: {}]  }
   0x1   :  { %v3109_v0 = vld [vmem:[%s4337_s2 + $0xb8] sm:$0xff]  ;;  %v3108_v4 = vld [vmem:[%s4337_s2 + $0xb0] sm:$0xff]  ;;  %v3107_v8 = vld [vmem:[%s4337_s2 + $0xa8] sm:$0xff] }
   0x2   :  { %v3093_v1 = vld [vmem:[%s4337_s2 + $0x38] sm:$0xff]  ;;  %661 = vmatpush.bf16.msra.mxu2 %v3109_v0  ;;  %v3092_v5 = vld [vmem:[%s4337_s2 + $0x30] sm:$0xff]  ;;  %v3091_v9 = vld [vmem:[%s4337_s2 + $0x28] sm:$0xff] }
   0x3   :  { %v3117_v2 = vld [vmem:[%s4337_s2 + $0xf8] sm:$0xff]  ;;  %635 = vmatpush.bf16.msra.mxu0 %v3093_v1  ;;  %v3116_v6 = vld [vmem:[%s4337_s2 + $0xf0] sm:$0xff]  ;;  %v3115_v10 = vld [vmem:[%s4337_s2 + $0xe8] sm:$0xff] }
   0x4   :  { %v3101_v3 = vld [vmem:[%s4337_s2 + $0x78] sm:$0xff]  ;;  %674 = vmatpush.bf16.msra.mxu3 %v3117_v2  ;;  %v3100_v7 = vld [vmem:[%s4337_s2 + $0x70] sm:$0xff]  ;;  %v3099_v11 = vld [vmem:[%s4337_s2 + $0x68] sm:$0xff] }
   0x5   :  { %648 = vmatpush.bf16.msra.mxu1 %v3101_v3  ;;  %v3405_v12 = vld [vmem:[%s4336_s1] sm:$0xff]  ;;  %v3410_v13 = vld [vmem:[%s4336_s1 + $0x8] sm:$0xff]  ;;  %v3105_v20 = vld [vmem:[%s4337_s2 + $0x98] sm:$0xff] }
   0x6   :  { %662 = vmatpush.bf16.msra.mxu2 %v3108_v4  ;;  %v25_v14 = vmul.f32 %v3405_v12, %v3405_v12  ;;  %v26_v15 = vmul.f32 %v3410_v13, %v3410_v13  ;;  %v3106_v16 = vld [vmem:[%s4337_s2 + $0xa0] sm:$0xff]  ;;  %v3089_v21 = vld [vmem:[%s4337_s2 + $0x18] sm:$0xff]  ;;  %v3104_v24 = vld [vmem:[%s4337_s2 + $0x90] sm:$0xff] }
   0x7   :  { %636 = vmatpush.bf16.msra.mxu0 %v3092_v5  ;;  %v3090_v17 = vld [vmem:[%s4337_s2 + $0x20] sm:$0xff]  ;;  %v3113_v22 = vld [vmem:[%s4337_s2 + $0xd8] sm:$0xff]  ;;  %v3088_v25 = vld [vmem:[%s4337_s2 + $0x10] sm:$0xff] }
   0x8   :  { %675 = vmatpush.bf16.msra.mxu3 %v3116_v6  ;;  %29 = vst [vmem:[#allocation1] ss:$4 sm:$0xff] %v25_v14  ;;  %v3114_v18 = vld [vmem:[%s4337_s2 + $0xe0] sm:$0xff]  ;;  %v3097_v23 = vld [vmem:[%s4337_s2 + $0x58] sm:$0xff]  ;;  %v3112_v27 = vld [vmem:[%s4337_s2 + $0xd0] sm:$0xff] }
   0x9   :  { %649 = vmatpush.bf16.msra.mxu1 %v3100_v7  ;;  %v3098_v19 = vld [vmem:[%s4337_s2 + $0x60] sm:$0xff]  ;;  %31 = vst [vmem:[#allocation1 + $0x20] ss:$4 sm:$0xff] %v26_v15  ;;  %v3457_v30 = vld [vmem:[%s4335_s0 + $0x8] sm:$0xff]  ;;  %v3096_v31 = vld [vmem:[%s4337_s2 + $0x50] sm:$0xff] }
   0xa   :  { %663 = vmatpush.bf16.msra.mxu2 %v3107_v8  ;;  %v3449_v26 = vld [vmem:[%s4335_s0] sm:$0xff]  ;;  %4363 = vst [vmem:[#allocation8_spill] sm:$0xff] %v3457_v30  ;;  %v3103_v42 = vld [vmem:[%s4337_s2 + $0x88] sm:$0xff]  ;;  %v3141_v51 = vld [vmem:[%s4337_s2 + $0x1b8] sm:$0xff] }
   0xb   :  { %637 = vmatpush.bf16.msra.mxu0 %v3091_v9  ;;  %4362 = vst [vmem:[#allocation7_spill] sm:$0xff] %v3449_v26  ;;  %v3087_v43 = vld [vmem:[%s4337_s2 + $0x8] sm:$0xff]  ;;  %v3102_v49 = vld [vmem:[%s4337_s2 + $0x80] sm:$0xff]  ;;  %v3125_v55 = vld [vmem:[%s4337_s2 + $0x138] sm:$0xff] }
   0xc   :  { %676 = vmatpush.bf16.msra.mxu3 %v3115_v10  ;;  %v3111_v45 = vld [vmem:[%s4337_s2 + $0xc8] sm:$0xff]  ;;  %v3086_v52 = vld [vmem:[%s4337_s2] sm:$0xff]  ;;  %v3149_v56 = vld [vmem:[%s4337_s2 + $0x1f8] sm:$0xff] }
   0xd   :  { %650 = vmatpush.bf16.msra.mxu1 %v3099_v11  ;;  %v3095_v46 = vld [vmem:[%s4337_s2 + $0x48] sm:$0xff]  ;;  %v3110_v53 = vld [vmem:[%s4337_s2 + $0xc0] sm:$0xff]  ;;  %v3133_v1 = vld [vmem:[%s4337_s2 + $0x178] sm:$0xff] }
   0xe   :  { %664 = vmatpush.bf16.msra.mxu2 %v3106_v16  ;;  %v3094_v61 = vld [vmem:[%s4337_s2 + $0x40] sm:$0xff]  ;;  %v3140_v5 = vld [vmem:[%s4337_s2 + $0x1b0] sm:$0xff] }
   0xf   :  { %638 = vmatpush.bf16.msra.mxu0 %v3090_v17  ;;  %v32_v28 = vld.sshfl [vmem:[#allocation1] sm:$0xff pattern:$0x73625140]  ;;  %v33_v29 = vld.sshfl [vmem:[#allocation1 + $0x8] sm:$0xff pattern:$0x73625140] }
  0x10   :  { %677 = vmatpush.bf16.msra.mxu3 %v3114_v18  ;;  %v34_v32 = vld.sshfl [vmem:[#allocation1 + $0x10] sm:$0xff pattern:$0x73625140]  ;;  %v35_v33 = vld.sshfl [vmem:[#allocation1 + $0x18] sm:$0xff pattern:$0x73625140] }
  0x11   :  { %651 = vmatpush.bf16.msra.mxu1 %v3098_v19  ;;  %v36_v34 = vld.sshfl [vmem:[#allocation1 + $0x20] sm:$0xff pattern:$0x73625140]  ;;  %v37_v35 = vld.sshfl [vmem:[#allocation1 + $0x28] sm:$0xff pattern:$0x73625140] }
  0x12   :  { %665 = vmatpush.bf16.msra.mxu2 %v3105_v20  ;;  %v38_v36 = vld.sshfl [vmem:[#allocation1 + $0x30] sm:$0xff pattern:$0x73625140]  ;;  %v39_v37 = vld.sshfl [vmem:[#allocation1 + $0x38] sm:$0xff pattern:$0x73625140] }
  0x13   :  { %639 = vmatpush.bf16.msra.mxu0 %v3089_v21  ;;  %v49_v38 = vsel %vm48_vm0, %v32_v28, 0.0  ;;  %v50_v39 = vsel %vm48_vm0, %v33_v29, 0.0  ;;  %v52_v40 = vsel %vm48_vm0, %v34_v32, 0.0  ;;  %92 = vst [vmem:[#allocation1] ss:$4 sm:$0xff] %v3449_v26  ;;  %v54_v44 = vsel %vm48_vm0, %v35_v33, 0.0 }
  0x14   :  { %678 = vmatpush.bf16.msra.mxu3 %v3113_v22  ;;  %v51_v41 = vadd.f32 %v50_v39, %v49_v38  ;;  %94 = vst [vmem:[#allocation1 + $0x20] ss:$4 sm:$0xff] %v3457_v30  ;;  %v56_v48 = vsel %vm48_vm0, %v36_v34, 0.0  ;;  %v58_v54 = vsel %vm48_vm0, %v37_v35, 0.0  ;;  %v60_v60 = vsel %vm48_vm0, %v38_v36, 0.0  ;;  %v3124_v8 = vld [vmem:[%s4337_s2 + $0x130] sm:$0xff] }
  0x15   :  { %652 = vmatpush.bf16.msra.mxu1 %v3097_v23  ;;  %v62_v4 = vsel %vm48_vm0, %v39_v37, 0.0  ;;  %v3148_v9 = vld [vmem:[%s4337_s2 + $0x1f0] sm:$0xff] }
  0x16   :  { %666 = vmatpush.bf16.msra.mxu2 %v3104_v24  ;;  %v53_v47 = vadd.f32 %v52_v40, %v51_v41 }
  0x17   :  { %640 = vmatpush.bf16.msra.mxu0 %v3088_v25 }
  0x18   :  { %679 = vmatpush.bf16.msra.mxu3 %v3112_v27  ;;  %v55_v50 = vadd.f32 %v54_v44, %v53_v47 }
  0x19   :  { %653 = vmatpush.bf16.msra.mxu1 %v3096_v31 }
  0x1a   :  { %667 = vmatpush.bf16.msra.mxu2 %v3103_v42  ;;  %v57_v57 = vadd.f32 %v56_v48, %v55_v50  ;;  %v97_v58 = vld.sshfl [vmem:[#allocation1 + $0x10] sm:$0xff pattern:$0x73625140]  ;;  %v95_v59 = vld.sshfl [vmem:[#allocation1] sm:$0xff pattern:$0x73625140] }
  0x1b   :  { %641 = vmatpush.bf16.msra.mxu0 %v3087_v43  ;;  %v113_v62 = vpack.c.bf16 %v97_v58, %v97_v58  ;;  %v98_v63 = vld.sshfl [vmem:[#allocation1 + $0x18] sm:$0xff pattern:$0x73625140]  ;;  %v111_v2 = vpack.c.bf16 %v95_v59, %v95_v59  ;;  %v96_v3 = vld.sshfl [vmem:[#allocation1 + $0x8] sm:$0xff pattern:$0x73625140] }
  0x1c   :  { %680 = vmatpush.bf16.msra.mxu3 %v3111_v45  ;;  %v59_v0 = vadd.f32 %v58_v54, %v57_v57  ;;  %v114_v6 = vpack.c.bf16 %v98_v63, %v98_v63  ;;  %v112_v10 = vpack.c.bf16 %v96_v3, %v96_v3 }
  0x1d   :  { %654 = vmatpush.bf16.msra.mxu1 %v3095_v46 }
  0x1e   :  { %668 = vmatpush.bf16.msra.mxu2 %v3102_v49  ;;  %v61_v7 = vadd.f32 %v60_v60, %v59_v0 }
  0x1f   :  { %642 = vmatpush.bf16.msra.mxu0 %v3086_v52 }
  0x20   :  { %681 = vmatpush.bf16.msra.mxu3 %v3110_v53 }
  0x21   :  { %655 = vmatpush.bf16.msra.mxu1 %v3094_v61  ;;  %669 = vmatmul.bf16.vlgmr.msra.gmra.mxu2 %v113_v62 }
  0x22   :  { %713 = vmatpush.bf16.msrb.mxu2 %v3141_v51 }
  0x23   :  { %687 = vmatpush.bf16.msrb.mxu0 %v3125_v55 }
  0x24   :  { %726 = vmatpush.bf16.msrb.mxu3 %v3149_v56 }
  0x25   :  { %9 = vsyncpa [#allocation5], 0  ;;  %v63_v11 = vadd.f32 %v62_v4, %v61_v7  ;;  %700 = vmatpush.bf16.msrb.mxu1 %v3133_v1  ;;  %v3132_v14 = vld [vmem:[%s4337_s2 + $0x170] sm:$0xff]  ;;  %643 = vmatmul.bf16.vlgmr.msra.gmra.mxu0 %v111_v2  ;;  %v3139_v15 = vld [vmem:[%s4337_s2 + $0x1a8] sm:$0xff]  ;;  %vm1599_vm6 = vcmask 1045508   ;;  %vm1601_vm7 = vcmask 1043456  }
  0x26   :  { %714 = vmatpush.bf16.msrb.mxu2 %v3140_v5  ;;  %682 = vmatmul.bf16.vlgmr.msra.gmra.mxu3 %v114_v6  ;;  %v3123_v16 = vld [vmem:[%s4337_s2 + $0x128] sm:$0xff]  ;;  %v3138_v19 = vld [vmem:[%s4337_s2 + $0x1a0] sm:$0xff]  ;;  %v3137_v23 = vld [vmem:[%s4337_s2 + $0x198] sm:$0xff]  ;;  %s2309_s24 = sshll.u32 %s4339_s4, 4  ;;  %vm2300_vm9 = vcmask 0   ;;  %s2310_s24 = int_to_ptr.hbm [resolvable:$true] %s2309_s24 }
  0x27   :  { %64 = vadd.xlane.f32.xlu0 %v63_v11  ;;  %688 = vmatpush.bf16.msrb.mxu0 %v3124_v8  ;;  %v3147_v17 = vld [vmem:[%s4337_s2 + $0x1e8] sm:$0xff]  ;;  %v3122_v20 = vld [vmem:[%s4337_s2 + $0x120] sm:$0xff]  ;;  %v3121_v24 = vld [vmem:[%s4337_s2 + $0x118] sm:$0xff] }
  0x28   :  { %727 = vmatpush.bf16.msrb.mxu3 %v3148_v9  ;;  %656 = vmatmul.bf16.vlgmr.msra.gmra.mxu1 %v112_v10  ;;  %v3131_v18 = vld [vmem:[%s4337_s2 + $0x168] sm:$0xff]  ;;  %v3146_v21 = vld [vmem:[%s4337_s2 + $0x1e0] sm:$0xff]  ;;  %v3145_v25 = vld [vmem:[%s4337_s2 + $0x1d8] sm:$0xff] }
  0x29   :  { %701 = vmatpush.bf16.msrb.mxu1 %v3132_v14  ;;  %v3130_v22 = vld [vmem:[%s4337_s2 + $0x160] sm:$0xff]  ;;  %v3129_v27 = vld [vmem:[%s4337_s2 + $0x158] sm:$0xff]  ;;  %v3136_v28 = vld [vmem:[%s4337_s2 + $0x190] sm:$0xff] }
  0x2a   :  { %715 = vmatpush.bf16.msrb.mxu2 %v3139_v15  ;;  %v3120_v29 = vld [vmem:[%s4337_s2 + $0x110] sm:$0xff]  ;;  %v3135_v33 = vld [vmem:[%s4337_s2 + $0x188] sm:$0xff]  ;;  %v3134_v37 = vld [vmem:[%s4337_s2 + $0x180] sm:$0xff] }
  0x2b   :  { %689 = vmatpush.bf16.msrb.mxu0 %v3123_v16  ;;  %v3144_v31 = vld [vmem:[%s4337_s2 + $0x1d0] sm:$0xff]  ;;  %v3119_v34 = vld [vmem:[%s4337_s2 + $0x108] sm:$0xff]  ;;  %v3118_v39 = vld [vmem:[%s4337_s2 + $0x100] sm:$0xff] }
  0x2c   :  { %728 = vmatpush.bf16.msrb.mxu3 %v3147_v17  ;;  %v3128_v32 = vld [vmem:[%s4337_s2 + $0x150] sm:$0xff]  ;;  %v3143_v35 = vld [vmem:[%s4337_s2 + $0x1c8] sm:$0xff]  ;;  %v99_v40 = vld.sshfl [vmem:[#allocation1 + $0x20] sm:$0xff pattern:$0x73625140] }
  0x2d   :  { %702 = vmatpush.bf16.msrb.mxu1 %v3131_v18  ;;  %v3127_v36 = vld [vmem:[%s4337_s2 + $0x148] sm:$0xff]  ;;  %v101_v38 = vld.sshfl [vmem:[#allocation1 + $0x30] sm:$0xff pattern:$0x73625140]  ;;  %v3142_v41 = vld [vmem:[%s4337_s2 + $0x1c0] sm:$0xff]  ;;  %v115_v46 = vpack.c.bf16 %v99_v40, %v99_v40 }
  0x2e   :  { %716 = vmatpush.bf16.msrb.mxu2 %v3138_v19  ;;  %v102_v42 = vld.sshfl [vmem:[#allocation1 + $0x38] sm:$0xff pattern:$0x73625140]  ;;  %v117_v43 = vpack.c.bf16 %v101_v38, %v101_v38  ;;  %v3126_v44 = vld [vmem:[%s4337_s2 + $0x140] sm:$0xff]  ;;  %v3619_v53 = vld [vmem:[%s4337_s2 + $0x30] sm:$0xff] }
  0x2f   :  { %690 = vmatpush.bf16.msrb.mxu0 %v3122_v20  ;;  %v100_v45 = vld.sshfl [vmem:[#allocation1 + $0x28] sm:$0xff pattern:$0x73625140]  ;;  %v118_v47 = vpack.c.bf16 %v102_v42, %v102_v42  ;;  %v3595_v49 = vld [vmem:[%s4337_s2 + $0x38] sm:$0xff]  ;;  %v3624_v54 = vld [vmem:[%s4337_s2 + $0x70] sm:$0xff] }
  0x30   :  { %729 = vmatpush.bf16.msrb.mxu3 %v3146_v21  ;;  %v116_v48 = vpack.c.bf16 %v100_v45, %v100_v45  ;;  %v3600_v50 = vld [vmem:[%s4337_s2 + $0x78] sm:$0xff]  ;;  %v3629_v55 = vld [vmem:[%s4337_s2 + $0xb0] sm:$0xff]  ;;  %v3643_v57 = vld [vmem:[%s4337_s2 + $0x28] sm:$0xff] }
  0x31   :  { %703 = vmatpush.bf16.msrb.mxu1 %v3130_v22  ;;  %v3605_v51 = vld [vmem:[%s4337_s2 + $0xb8] sm:$0xff]  ;;  %v3634_v56 = vld [vmem:[%s4337_s2 + $0xf0] sm:$0xff]  ;;  %v3648_v58 = vld [vmem:[%s4337_s2 + $0x68] sm:$0xff] }
  0x32   :  { %717 = vmatpush.bf16.msrb.mxu2 %v3137_v23  ;;  %v3610_v52 = vld [vmem:[%s4337_s2 + $0xf8] sm:$0xff]  ;;  %v3653_v59 = vld [vmem:[%s4337_s2 + $0xa8] sm:$0xff]  ;;  %v3667_v61 = vld [vmem:[%s4337_s2 + $0x20] sm:$0xff] }
  0x33   :  { %691 = vmatpush.bf16.msrb.mxu0 %v3121_v24  ;;  %v3658_v60 = vld [vmem:[%s4337_s2 + $0xe8] sm:$0xff]  ;;  %v3672_v62 = vld [vmem:[%s4337_s2 + $0x60] sm:$0xff]  ;;  %v3691_v1 = vld [vmem:[%s4337_s2 + $0x18] sm:$0xff] }
  0x34   :  { %730 = vmatpush.bf16.msrb.mxu3 %v3145_v25  ;;  %v3677_v63 = vld [vmem:[%s4337_s2 + $0xa0] sm:$0xff]  ;;  %v3696_v2 = vld [vmem:[%s4337_s2 + $0x58] sm:$0xff]  ;;  %v3715_v5 = vld [vmem:[%s4337_s2 + $0x10] sm:$0xff] }
  0x35   :  { %704 = vmatpush.bf16.msrb.mxu1 %v3129_v27  ;;  %v3682_v0 = vld [vmem:[%s4337_s2 + $0xe0] sm:$0xff]  ;;  %v3701_v3 = vld [vmem:[%s4337_s2 + $0x98] sm:$0xff]  ;;  %v3720_v6 = vld [vmem:[%s4337_s2 + $0x50] sm:$0xff] }
  0x36   :  { %718 = vmatpush.bf16.msrb.mxu2 %v3136_v28  ;;  %v3706_v4 = vld [vmem:[%s4337_s2 + $0xd8] sm:$0xff]  ;;  %v3725_v7 = vld [vmem:[%s4337_s2 + $0x90] sm:$0xff]  ;;  %v3739_v9 = vld [vmem:[%s4337_s2 + $0x8] sm:$0xff] }
  0x37   :  { %692 = vmatpush.bf16.msrb.mxu0 %v3120_v29  ;;  %v3730_v8 = vld [vmem:[%s4337_s2 + $0xd0] sm:$0xff]  ;;  %v3744_v10 = vld [vmem:[%s4337_s2 + $0x48] sm:$0xff]  ;;  %v3765_v16 = vld [vmem:[%s4337_s2] sm:$0xff] }
  0x38   :  { %731 = vmatpush.bf16.msrb.mxu3 %v3144_v31  ;;  %v3749_v11 = vld [vmem:[%s4337_s2 + $0x88] sm:$0xff]  ;;  %v3770_v17 = vld [vmem:[%s4337_s2 + $0x40] sm:$0xff]  ;;  %v3786_v20 = vld [vmem:[%s4337_s2 + $0x138] sm:$0xff] }
  0x39   :  { %705 = vmatpush.bf16.msrb.mxu1 %v3128_v32  ;;  %v3754_v14 = vld [vmem:[%s4337_s2 + $0xc8] sm:$0xff]  ;;  %v3775_v18 = vld [vmem:[%s4337_s2 + $0x80] sm:$0xff]  ;;  %v3791_v21 = vld [vmem:[%s4337_s2 + $0x178] sm:$0xff] }
  0x3a   :  { %719 = vmatpush.bf16.msrb.mxu2 %v3135_v33  ;;  %v3781_v19 = vld [vmem:[%s4337_s2 + $0xc0] sm:$0xff]  ;;  %v3798_v22 = vld [vmem:[%s4337_s2 + $0x1b8] sm:$0xff]  ;;  %v3814_v24 = vld [vmem:[%s4337_s2 + $0x130] sm:$0xff] }
  0x3b   :  { %693 = vmatpush.bf16.msrb.mxu0 %v3119_v34  ;;  %v3803_v23 = vld [vmem:[%s4337_s2 + $0x1f8] sm:$0xff]  ;;  %v3819_v25 = vld [vmem:[%s4337_s2 + $0x170] sm:$0xff]  ;;  %v3837_v33 = vld [vmem:[%s4337_s2 + $0x128] sm:$0xff] }
  0x3c   :  { %732 = vmatpush.bf16.msrb.mxu3 %v3143_v35  ;;  %v3824_v27 = vld [vmem:[%s4337_s2 + $0x1b0] sm:$0xff]  ;;  %v3842_v34 = vld [vmem:[%s4337_s2 + $0x168] sm:$0xff]  ;;  %v3861_v40 = vld [vmem:[%s4337_s2 + $0x120] sm:$0xff] }
  0x3d   :  { %706 = vmatpush.bf16.msrb.mxu1 %v3127_v36  ;;  %v3829_v28 = vld [vmem:[%s4337_s2 + $0x1f0] sm:$0xff]  ;;  %4364 = vst [vmem:[#allocation9_spill] sm:$0xff] %v3842_v34  ;;  %v3849_v35 = vld [vmem:[%s4337_s2 + $0x1a8] sm:$0xff] }
  0x3e   :  { %720 = vmatpush.bf16.msrb.mxu2 %v3134_v37  ;;  %4365 = vst [vmem:[#allocation10_spill] sm:$0xff] %v3849_v35  ;;  %v3854_v36 = vld [vmem:[%s4337_s2 + $0x1e8] sm:$0xff] }
  0x3f   :  { %694 = vmatpush.bf16.msrb.mxu0 %v3118_v39  ;;  %4366 = vst [vmem:[#allocation11_spill] sm:$0xff] %v3854_v36 }
  0x40   :  { %733 = vmatpush.bf16.msrb.mxu3 %v3142_v41  ;;  %4367 = vst [vmem:[#allocation12_spill] sm:$0xff] %v3861_v40  ;;  %v3866_v41 = vld [vmem:[%s4337_s2 + $0x160] sm:$0xff] }
  0x41   :  { %721 = vmatmul.bf16.vlgmr.msrb.gmra.mxu2 %v117_v43  ;;  %707 = vmatpush.bf16.msrb.mxu1 %v3126_v44  ;;  %4368 = vst [vmem:[#allocation13_spill] sm:$0xff] %v3866_v41  ;;  %v3873_v43 = vld [vmem:[%s4337_s2 + $0x1a0] sm:$0xff] }
  0x42   :  { %695 = vmatmul.bf16.vlgmr.msrb.gmra.mxu0 %v115_v46  ;;  %1333 = vmatpush.bf16.msra.mxu2 %v3605_v51  ;;  %4369 = vst [vmem:[#allocation14_spill] sm:$0xff] %v3873_v43  ;;  %v3878_v44 = vld [vmem:[%s4337_s2 + $0x1e0] sm:$0xff] }
  0x43   :  { %734 = vmatmul.bf16.vlgmr.msrb.gmra.mxu3 %v118_v47  ;;  %1307 = vmatpush.bf16.msra.mxu0 %v3595_v49  ;;  %4370 = vst [vmem:[#allocation15_spill] sm:$0xff] %v3878_v44 }
  0x44   :  { %708 = vmatmul.bf16.vlgmr.msrb.gmra.mxu1 %v116_v48  ;;  %1346 = vmatpush.bf16.msra.mxu3 %v3610_v52 }
  0x45   :  { %1320 = vmatpush.bf16.msra.mxu1 %v3600_v50 }
  0x46   :  { %1334 = vmatpush.bf16.msra.mxu2 %v3629_v55 }
  0x47   :  { %1308 = vmatpush.bf16.msra.mxu0 %v3619_v53 }
  0x48   :  { %1347 = vmatpush.bf16.msra.mxu3 %v3634_v56 }
  0x49   :  { %1321 = vmatpush.bf16.msra.mxu1 %v3624_v54 }
  0x4a   :  { %1335 = vmatpush.bf16.msra.mxu2 %v3653_v59 }
  0x4b   :  { %1309 = vmatpush.bf16.msra.mxu0 %v3643_v57 }
  0x4c   :  { %1348 = vmatpush.bf16.msra.mxu3 %v3658_v60 }
  0x4d   :  { %1322 = vmatpush.bf16.msra.mxu1 %v3648_v58 }
  0x4e   :  { %1336 = vmatpush.bf16.msra.mxu2 %v3677_v63 }
  0x4f   :  { %1310 = vmatpush.bf16.msra.mxu0 %v3667_v61 }
  0x50   :  { %1349 = vmatpush.bf16.msra.mxu3 %v3682_v0 }
  0x51   :  { %1323 = vmatpush.bf16.msra.mxu1 %v3672_v62 }
  0x52   :  { %1337 = vmatpush.bf16.msra.mxu2 %v3701_v3 }
  0x53   :  { %1311 = vmatpush.bf16.msra.mxu0 %v3691_v1 }
  0x54   :  { %1350 = vmatpush.bf16.msra.mxu3 %v3706_v4 }
  0x55   :  { %1324 = vmatpush.bf16.msra.mxu1 %v3696_v2 }
  0x56   :  { %1338 = vmatpush.bf16.msra.mxu2 %v3725_v7 }
  0x57   :  { %1312 = vmatpush.bf16.msra.mxu0 %v3715_v5 }
  0x58   :  { %1351 = vmatpush.bf16.msra.mxu3 %v3730_v8 }
  0x59   :  { %1325 = vmatpush.bf16.msra.mxu1 %v3720_v6 }
  0x5a   :  { %1339 = vmatpush.bf16.msra.mxu2 %v3749_v11 }
  0x5b   :  { %1313 = vmatpush.bf16.msra.mxu0 %v3739_v9 }
  0x5c   :  { %1352 = vmatpush.bf16.msra.mxu3 %v3754_v14 }
  0x5d   :  { %1326 = vmatpush.bf16.msra.mxu1 %v3744_v10 }
  0x5e   :  { %1340 = vmatpush.bf16.msra.mxu2 %v3775_v18 }
  0x5f   :  { %1314 = vmatpush.bf16.msra.mxu0 %v3765_v16 }
  0x60   :  { %1353 = vmatpush.bf16.msra.mxu3 %v3781_v19 }
  0x61   :  { %1327 = vmatpush.bf16.msra.mxu1 %v3770_v17 }
  0x62   :  { %1385 = vmatpush.bf16.msrb.mxu2 %v3798_v22 }
  0x63   :  { %1359 = vmatpush.bf16.msrb.mxu0 %v3786_v20 }
  0x64   :  { %1398 = vmatpush.bf16.msrb.mxu3 %v3803_v23 }
  0x65   :  { %1372 = vmatpush.bf16.msrb.mxu1 %v3791_v21 }
  0x66   :  { %1386 = vmatpush.bf16.msrb.mxu2 %v3824_v27 }
  0x67   :  { %1360 = vmatpush.bf16.msrb.mxu0 %v3814_v24 }
  0x68   :  { %1399 = vmatpush.bf16.msrb.mxu3 %v3829_v28 }
  0x69   :  { %1373 = vmatpush.bf16.msrb.mxu1 %v3819_v25 }
  0x6a   :  { %1387 = vmatpush.bf16.msrb.mxu2 %v3849_v35  ;;  %v3338_v35 = vmov 269488144  }
  0x6b   :  { %1361 = vmatpush.bf16.msrb.mxu0 %v3837_v33 }
  0x6c   :  { %1400 = vmatpush.bf16.msrb.mxu3 %v3854_v36 }
  0x6d   :  { %1374 = vmatpush.bf16.msrb.mxu1 %v3842_v34  ;;  %v82_v34 = vunpack.c.l.s4 %v3338_v35  ;;  %v3958_v35 = vld [vmem:[%s4337_s2 + $0x1c8] sm:$0xff] }
  0x6e   :  { %1388 = vmatpush.bf16.msrb.mxu2 %v3873_v43  ;;  %4380 = vst [vmem:[#allocation25_spill] sm:$0xff] %v3958_v35 }
  0x6f   :  { %1362 = vmatpush.bf16.msrb.mxu0 %v3861_v40  ;;  %v3922_v40 = vld [vmem:[%s4337_s2 + $0x150] sm:$0xff] }
  0x70   :  { %1401 = vmatpush.bf16.msrb.mxu3 %v3878_v44  ;;  %4374 = vst [vmem:[#allocation19_spill] sm:$0xff] %v3922_v40 }
  0x71   :  { %1375 = vmatpush.bf16.msrb.mxu1 %v3866_v41 }
  0x9a   :  { %v3760_v15 = vpop.xlane.xlu0 %64 }
  0x9b   :  { %3284 = vrsqrt.f32 %v3760_v15  ;;  %vm73_vm1 = vcmp.eq.f32.partialorder %v3760_v15, inf  ;;  %v76_v44 = vand.u32 2147483648, %v3760_v15  ;;  %vm75_vm2 = vcmp.eq.f32.partialorder %v3760_v15, 0.0 }
  0xa1   :  { %v3285_v29 = vpop.eup %3284 }
  0xa2   :  { %v67_v31 = vmul.f32 %v3285_v29, %v3760_v15  ;;  %v644_v32 = vpop.f32.mrf.mxu0 }
  0xa4   :  { %v68_v37 = vmul.f32 %v3285_v29, %v67_v31  ;;  %v670_v42 = vpop.f32.mrf.mxu2  ;;  %v3887_v31 = vld [vmem:[%s4337_s2 + $0x118] sm:$0xff] }
  0xa5   :  { %v657_v38 = vpop.f32.mrf.mxu1  ;;  %4371 = vst [vmem:[#allocation16_spill] sm:$0xff] %v3887_v31  ;;  %1363 = vmatpush.bf16.msrb.mxu0 %v3887_v31 }
  0xa6   :  { %v69_v39 = vmul.f32 0.5, %v68_v37  ;;  %v3892_v37 = vld [vmem:[%s4337_s2 + $0x158] sm:$0xff] }
  0xa7   :  { %4372 = vst [vmem:[#allocation17_spill] sm:$0xff] %v3892_v37  ;;  %1376 = vmatpush.bf16.msrb.mxu1 %v3892_v37 }
  0xa8   :  { %v70_v45 = vsub.f32 1.5, %v69_v39 }
  0xa9   :  { %v683_v46 = vpop.f32.mrf.mxu3 }
  0xaa   :  { %v71_v47 = vmul.f32 %v3285_v29, %v70_v45  ;;  %v646_v48 = vpop.f32.mrf.mxu0  ;;  %v3897_v29 = vld [vmem:[%s4337_s2 + $0x198] sm:$0xff]  ;;  %v3281_v45 = vld [vmem:[%s4338_s3] ss:$0 sm:$0xff] }
  0xab   :  { %v3906_v48 = vld [vmem:[%s4337_s2 + $0x1d8] sm:$0xff]  ;;  %1389 = vmatpush.bf16.msrb.mxu2 %v3897_v29  ;;  %v645_v31 = vadd.f32 %v3281_v45, %v644_v32  ;;  %1377 = vmatpush.bf16.msrb.mxu1 %v3922_v40  ;;  %v3953_v32 = vld [vmem:[%s4337_s2 + $0x188] sm:$0xff]  ;;  %v3965_v45 = vld [vmem:[%s4337_s2 + $0x100] sm:$0xff] }
  0xac   :  { %v72_v39 = vmul.f32 %v71_v47, %v3760_v15  ;;  %v3917_v47 = vld [vmem:[%s4337_s2 + $0x110] sm:$0xff]  ;;  %1402 = vmatpush.bf16.msrb.mxu3 %v3906_v48  ;;  %4379 = vst [vmem:[#allocation24_spill] sm:$0xff] %v3953_v32 }
  0xad   :  { %v659_v43 = vpop.f32.mrf.mxu1  ;;  %4373 = vst [vmem:[#allocation18_spill] sm:$0xff] %v3917_v47  ;;  %1364 = vmatpush.bf16.msrb.mxu0 %v3917_v47 }
  0xae   :  { %v74_v41 = vsel %vm73_vm1, %v3760_v15, %v72_v39  ;;  %v672_v43 = vpop.f32.mrf.mxu2  ;;  %v3929_v15 = vld [vmem:[%s4337_s2 + $0x190] sm:$0xff]  ;;  %4381 = vst [vmem:[#allocation26_spill] sm:$0xff] %v3965_v45 }
  0xaf   :  { %v77_v36 = vsel %vm75_vm2, %v76_v44, %v74_v41  ;;  %4375 = vst [vmem:[#allocation20_spill] sm:$0xff] %v3929_v15  ;;  %v3934_v39 = vld [vmem:[%s4337_s2 + $0x1d0] sm:$0xff]  ;;  %v3941_v44 = vld [vmem:[%s4337_s2 + $0x108] sm:$0xff]  ;;  %1390 = vmatpush.bf16.msrb.mxu2 %v3929_v15 }
  0xb0   :  { %4376 = vst [vmem:[#allocation21_spill] sm:$0xff] %v3934_v39  ;;  %v78_v37 = vadd.f32 1e-07, %v77_v36  ;;  %v3946_v43 = vld [vmem:[%s4337_s2 + $0x148] sm:$0xff]  ;;  %1403 = vmatpush.bf16.msrb.mxu3 %v3934_v39  ;;  %v658_v36 = vadd.f32 %v657_v38, %v645_v31  ;;  %v3982_v38 = vld [vmem:[%s4337_s2 + $0x1c0] sm:$0xff] }
  0xb1   :  { %v685_v41 = vpop.f32.mrf.mxu3  ;;  %4377 = vst [vmem:[#allocation22_spill] sm:$0xff] %v3941_v44  ;;  %1365 = vmatpush.bf16.msrb.mxu0 %v3941_v44  ;;  %1378 = vmatpush.bf16.msrb.mxu1 %v3946_v43 }
  0xb2   :  { %3286 = vrcp.f32 %v78_v37  ;;  %4378 = vst [vmem:[#allocation23_spill] sm:$0xff] %v3946_v43  ;;  %v83_v37 = vunpack.c.0.s8 %v82_v34  ;;  %v3970_v41 = vld [vmem:[%s4337_s2 + $0x140] sm:$0xff]  ;;  %v671_v43 = vadd.f32 %v670_v42, %v658_v36 }
  0xb3   :  { %4382 = vst [vmem:[#allocation27_spill] sm:$0xff] %v3970_v41  ;;  %1391 = vmatpush.bf16.msrb.mxu2 %v3953_v32  ;;  %v3977_v34 = vld [vmem:[%s4337_s2 + $0x180] sm:$0xff] }
  0xb4   :  { %1404 = vmatpush.bf16.msrb.mxu3 %v3958_v35  ;;  %4383 = vst [vmem:[#allocation28_spill] sm:$0xff] %v3977_v34  ;;  %v684_v39 = vadd.f32 %v683_v46, %v671_v43 }
  0xb5   :  { %1366 = vmatpush.bf16.msrb.mxu0 %v3965_v45  ;;  %1379 = vmatpush.bf16.msrb.mxu1 %v3970_v41 }
  0xb7   :  { %1392 = vmatpush.bf16.msrb.mxu2 %v3977_v34 }
  0xb8   :  { %v3287_v31 = vpop.eup %3286  ;;  %1405 = vmatpush.bf16.msrb.mxu3 %v3982_v38 }
  0xb9   :  { %v84_v44 = vperm.slane %v3287_v31, %v83_v37  ;;  %v18_v37 = vlaneseq }
  0xbb   :  { %v86_v32 = vmul.f32 %v84_v44, %v3405_v12  ;;  %v87_v35 = vmul.f32 %v84_v44, %v3410_v13  ;;  %v3992_v45 = vand.u32 127, %v18_v37 }
  0xbd   :  { %v758_v15 = vmul.f32 10.0, %v86_v32  ;;  %v759_v40 = vmul.f32 10.0, %v87_v35  ;;  %vm20_vm3 = vcmp.lt.s32.totalorder %v3992_v45, 10 }
  0xbf   :  { %v760_v47 = vadd.f32 %v758_v15, %v3449_v26  ;;  %v761_v42 = vadd.f32 %v759_v40, %v3457_v30  ;;  %v696_v36 = vpop.f32.mrf.mxu0 }
  0xc0   :  { %v697_v31 = vadd.f32 %v696_v36, %v684_v39 }
  0xc1   :  { %764 = vst [vmem:[#allocation1] ss:$4 sm:$0xff] %v760_v47  ;;  %v709_v41 = vpop.f32.mrf.mxu1 }
  0xc2   :  { %766 = vst [vmem:[#allocation1 + $0x20] ss:$4 sm:$0xff] %v761_v42  ;;  %v710_v12 = vadd.f32 %v709_v41, %v697_v31 }
  0xc4   :  { %v722_v13 = vpop.f32.mrf.mxu2 }
  0xc5   :  { %v723_v44 = vadd.f32 %v722_v13, %v710_v12 }
  0xc6   :  { %v735_v34 = vpop.f32.mrf.mxu3 }
  0xc7   :  { %v736_v46 = vadd.f32 %v735_v34, %v723_v44  ;;  %v698_v43 = vpop.f32.mrf.mxu0 }
  0xc8   :  { %v767_v32 = vld.sshfl [vmem:[#allocation1] sm:$0xff pattern:$0x73625140]  ;;  %v768_v15 = vld.sshfl [vmem:[#allocation1 + $0x8] sm:$0xff pattern:$0x73625140] }
  0xc9   :  { %v783_v35 = vpack.c.bf16 %v767_v32, %v767_v32  ;;  %v784_v40 = vpack.c.bf16 %v768_v15, %v768_v15  ;;  %v769_v30 = vld.sshfl [vmem:[#allocation1 + $0x10] sm:$0xff pattern:$0x73625140]  ;;  %v770_v26 = vld.sshfl [vmem:[#allocation1 + $0x18] sm:$0xff pattern:$0x73625140]  ;;  %v711_v39 = vpop.f32.mrf.mxu1 }
  0xca   :  { %v785_v47 = vpack.c.bf16 %v769_v30, %v769_v30  ;;  %v786_v36 = vpack.c.bf16 %v770_v26, %v770_v26  ;;  %v3997_v41 = vsel %vm20_vm3, %v736_v46, -1e+30  ;;  %v771_v26 = vld.sshfl [vmem:[#allocation1 + $0x20] sm:$0xff pattern:$0x73625140] }
  0xcb   :  { %1315 = vmatmul.bf16.vlgmr.msra.gmra.mxu0 %v783_v35  ;;  %1328 = vmatmul.bf16.vlgmr.msra.gmra.mxu1 %v784_v40  ;;  %v742_v42 = vsel %vm48_vm0, %v3997_v41, -inf  ;;  %v772_v30 = vld.sshfl [vmem:[#allocation1 + $0x28] sm:$0xff pattern:$0x73625140] }
  0xcc   :  { %1341 = vmatmul.bf16.vlgmr.msra.gmra.mxu2 %v785_v47  ;;  %1354 = vmatmul.bf16.vlgmr.msra.gmra.mxu3 %v786_v36  ;;  %v724_v34 = vpop.f32.mrf.mxu2  ;;  %v773_v31 = vld.sshfl [vmem:[#allocation1 + $0x30] sm:$0xff pattern:$0x73625140]  ;;  %v774_v12 = vld.sshfl [vmem:[#allocation1 + $0x38] sm:$0xff pattern:$0x73625140]  ;;  %v788_v13 = vpack.c.bf16 %v772_v30, %v772_v30 }
  0xcd   :  { %743 = vmax.xlane.f32.xlu0 %v742_v42  ;;  %1433 = vmatpush.bf16.xpose.msra.mxu0 %v3595_v49  ;;  %v787_v49 = vpack.c.bf16 %v771_v26, %v771_v26  ;;  %v789_v44 = vpack.c.bf16 %v773_v31, %v773_v31 }
  0xce   :  { %v737_v37 = vpop.f32.mrf.mxu3  ;;  %1446 = vmatpush.bf16.xpose.msra.mxu1 %v3600_v50  ;;  %1459 = vmatpush.bf16.xpose.msra.mxu2 %v3605_v51  ;;  %v790_v50 = vpack.c.bf16 %v774_v12, %v774_v12  ;;  %v4384_v51 = vld [vmem:[#allocation9_spill] sm:$0xff] }
  0xcf   :  { %1472 = vmatpush.bf16.xpose.msra.mxu3 %v3610_v52  ;;  %v4385_v52 = vld [vmem:[#allocation10_spill] sm:$0xff] }
  0xd5   :  { %1434 = vmatpush.bf16.xpose.msra.mxu0 %v3619_v53  ;;  %v4386_v53 = vld [vmem:[#allocation11_spill] sm:$0xff] }
  0xd6   :  { %1447 = vmatpush.bf16.xpose.msra.mxu1 %v3624_v54  ;;  %1460 = vmatpush.bf16.xpose.msra.mxu2 %v3629_v55  ;;  %v4387_v54 = vld [vmem:[#allocation12_spill] sm:$0xff]  ;;  %v4388_v55 = vld [vmem:[#allocation13_spill] sm:$0xff] }
  0xd7   :  { %1473 = vmatpush.bf16.xpose.msra.mxu3 %v3634_v56  ;;  %v4389_v56 = vld [vmem:[#allocation14_spill] sm:$0xff] }
  0xdb   :  { %1367 = vmatmul.bf16.vlgmr.msrb.gmra.mxu0 %v787_v49  ;;  %1380 = vmatmul.bf16.vlgmr.msrb.gmra.mxu1 %v788_v13 }
  0xdc   :  { %1393 = vmatmul.bf16.vlgmr.msrb.gmra.mxu2 %v789_v44  ;;  %1406 = vmatmul.bf16.vlgmr.msrb.gmra.mxu3 %v790_v50 }
  0xdd   :  { %1435 = vmatpush.bf16.xpose.msra.mxu0 %v3643_v57  ;;  %v4390_v57 = vld [vmem:[#allocation15_spill] sm:$0xff] }
  0xde   :  { %1448 = vmatpush.bf16.xpose.msra.mxu1 %v3648_v58  ;;  %1461 = vmatpush.bf16.xpose.msra.mxu2 %v3653_v59  ;;  %v4391_v58 = vld [vmem:[#allocation16_spill] sm:$0xff]  ;;  %v4392_v59 = vld [vmem:[#allocation17_spill] sm:$0xff] }
  0xdf   :  { %1474 = vmatpush.bf16.xpose.msra.mxu3 %v3658_v60  ;;  %v4393_v60 = vld [vmem:[#allocation18_spill] sm:$0xff] }
  0xe5   :  { %1436 = vmatpush.bf16.xpose.msra.mxu0 %v3667_v61  ;;  %v4394_v61 = vld [vmem:[#allocation19_spill] sm:$0xff] }
  0xe6   :  { %1449 = vmatpush.bf16.xpose.msra.mxu1 %v3672_v62  ;;  %1462 = vmatpush.bf16.xpose.msra.mxu2 %v3677_v63  ;;  %v4395_v62 = vld [vmem:[#allocation20_spill] sm:$0xff]  ;;  %v4396_v63 = vld [vmem:[#allocation21_spill] sm:$0xff] }
  0xe7   :  { %1475 = vmatpush.bf16.xpose.msra.mxu3 %v3682_v0  ;;  %v4397_v0 = vld [vmem:[#allocation22_spill] sm:$0xff] }
  0xed   :  { %1437 = vmatpush.bf16.xpose.msra.mxu0 %v3691_v1  ;;  %v4398_v1 = vld [vmem:[#allocation23_spill] sm:$0xff] }
  0xee   :  { %1450 = vmatpush.bf16.xpose.msra.mxu1 %v3696_v2  ;;  %1463 = vmatpush.bf16.xpose.msra.mxu2 %v3701_v3  ;;  %v4399_v2 = vld [vmem:[#allocation24_spill] sm:$0xff]  ;;  %v4400_v3 = vld [vmem:[#allocation25_spill] sm:$0xff] }
  0xef   :  { %1476 = vmatpush.bf16.xpose.msra.mxu3 %v3706_v4  ;;  %v4401_v4 = vld [vmem:[#allocation26_spill] sm:$0xff] }
  0xf5   :  { %1438 = vmatpush.bf16.xpose.msra.mxu0 %v3715_v5  ;;  %v4402_v5 = vld [vmem:[#allocation27_spill] sm:$0xff] }
  0xf6   :  { %1451 = vmatpush.bf16.xpose.msra.mxu1 %v3720_v6  ;;  %1464 = vmatpush.bf16.xpose.msra.mxu2 %v3725_v7  ;;  %v4403_v6 = vld [vmem:[#allocation28_spill] sm:$0xff] }
  0xf7   :  { %1477 = vmatpush.bf16.xpose.msra.mxu3 %v3730_v8 }
  0xfd   :  { %1439 = vmatpush.bf16.xpose.msra.mxu0 %v3739_v9  ;;  %v3282_v9 = vld [vmem:[%s4338_s3] ss:$0 sm:$0xff] }
  0xfe   :  { %1452 = vmatpush.bf16.xpose.msra.mxu1 %v3744_v10  ;;  %1465 = vmatpush.bf16.xpose.msra.mxu2 %v3749_v11 }
  0xff   :  { %1478 = vmatpush.bf16.xpose.msra.mxu3 %v3754_v14 }
 0x105   :  { %1440 = vmatpush.bf16.xpose.msra.mxu0 %v3765_v16 }
 0x106   :  { %1453 = vmatpush.bf16.xpose.msra.mxu1 %v3770_v17  ;;  %1466 = vmatpush.bf16.xpose.msra.mxu2 %v3775_v18 }
 0x107   :  { %1479 = vmatpush.bf16.xpose.msra.mxu3 %v3781_v19 }
 0x10d   :  { %1485 = vmatpush.bf16.xpose.msrb.mxu0 %v3786_v20 }
 0x10e   :  { %1498 = vmatpush.bf16.xpose.msrb.mxu1 %v3791_v21  ;;  %1511 = vmatpush.bf16.xpose.msrb.mxu2 %v3798_v22 }
 0x10f   :  { %1524 = vmatpush.bf16.xpose.msrb.mxu3 %v3803_v23 }
 0x115   :  { %1486 = vmatpush.bf16.xpose.msrb.mxu0 %v3814_v24 }
 0x116   :  { %1499 = vmatpush.bf16.xpose.msrb.mxu1 %v3819_v25  ;;  %1512 = vmatpush.bf16.xpose.msrb.mxu2 %v3824_v27 }
 0x117   :  { %1525 = vmatpush.bf16.xpose.msrb.mxu3 %v3829_v28 }
 0x11d   :  { %1487 = vmatpush.bf16.xpose.msrb.mxu0 %v3837_v33 }
 0x11e   :  { %1500 = vmatpush.bf16.xpose.msrb.mxu1 %v4384_v51  ;;  %1513 = vmatpush.bf16.xpose.msrb.mxu2 %v4385_v52 }
 0x11f   :  { %1526 = vmatpush.bf16.xpose.msrb.mxu3 %v4386_v53 }
 0x125   :  { %1488 = vmatpush.bf16.xpose.msrb.mxu0 %v4387_v54 }
 0x126   :  { %1501 = vmatpush.bf16.xpose.msrb.mxu1 %v4388_v55  ;;  %1514 = vmatpush.bf16.xpose.msrb.mxu2 %v4389_v56 }
 0x127   :  { %1527 = vmatpush.bf16.xpose.msrb.mxu3 %v4390_v57 }
 0x12d   :  { %1489 = vmatpush.bf16.xpose.msrb.mxu0 %v4391_v58 }
 0x12e   :  { %1502 = vmatpush.bf16.xpose.msrb.mxu1 %v4392_v59  ;;  %1515 = vmatpush.bf16.xpose.msrb.mxu2 %v3897_v29 }
 0x12f   :  { %1528 = vmatpush.bf16.xpose.msrb.mxu3 %v3906_v48 }
 0x135   :  { %1490 = vmatpush.bf16.xpose.msrb.mxu0 %v4393_v60 }
 0x136   :  { %1503 = vmatpush.bf16.xpose.msrb.mxu1 %v4394_v61  ;;  %1516 = vmatpush.bf16.xpose.msrb.mxu2 %v4395_v62 }
 0x137   :  { %1529 = vmatpush.bf16.xpose.msrb.mxu3 %v4396_v63 }
 0x13d   :  { %1491 = vmatpush.bf16.xpose.msrb.mxu0 %v4397_v0 }
 0x13e   :  { %1504 = vmatpush.bf16.xpose.msrb.mxu1 %v4398_v1  ;;  %1517 = vmatpush.bf16.xpose.msrb.mxu2 %v4399_v2 }
 0x13f   :  { %1530 = vmatpush.bf16.xpose.msrb.mxu3 %v4400_v3 }
 0x140   :  { %v744_v25 = vpop.xlane.xlu0 %743 }
 0x141   :  { %v745_v28 = vsub.f32 %v3997_v41, %v744_v25 }
 0x145   :  { %1492 = vmatpush.bf16.xpose.msrb.mxu0 %v4401_v4 }
 0x146   :  { %1505 = vmatpush.bf16.xpose.msrb.mxu1 %v4402_v5  ;;  %1518 = vmatpush.bf16.xpose.msrb.mxu2 %v4403_v6 }
 0x147   :  { %1531 = vmatpush.bf16.xpose.msrb.mxu3 %v3982_v38  ;;  %v746_v38 = vmul.f32 1.442695, %v745_v28 }
 0x148   :  { %v1316_v7 = vpop.f32.mrf.mxu0  ;;  %v1329_v8 = vpop.f32.mrf.mxu1 }
 0x149   :  { %v1317_v10 = vadd.f32 %v3282_v9, %v1316_v7  ;;  %3288 = vpow2.f32 %v746_v38 }
 0x14b   :  { %v1330_v18 = vadd.f32 %v1329_v8, %v1317_v10 }
 0x14f   :  { %v1342_v11 = vpop.f32.mrf.mxu2  ;;  %v1355_v14 = vpop.f32.mrf.mxu3 }
 0x150   :  { %v1318_v16 = vpop.f32.mrf.mxu0  ;;  %v1331_v17 = vpop.f32.mrf.mxu1  ;;  %v1343_v19 = vadd.f32 %v1342_v11, %v1330_v18 }
 0x151   :  { %v3289_v36 = vpop.eup %3288 }
 0x152   :  { %v1356_v22 = vadd.f32 %v1355_v14, %v1343_v19  ;;  %v748_v42 = vsel %vm48_vm0, %v3289_v36, 0.0 }
 0x157   :  { %v1344_v20 = vpop.f32.mrf.mxu2  ;;  %v1357_v21 = vpop.f32.mrf.mxu3 }
 0x158   :  { %v1368_v23 = vpop.f32.mrf.mxu0  ;;  %v1381_v24 = vpop.f32.mrf.mxu1 }
 0x159   :  { %v1369_v27 = vadd.f32 %v1368_v23, %v1356_v22 }
 0x15b   :  { %v1382_v33 = vadd.f32 %v1381_v24, %v1369_v27 }
 0x15f   :  { %v1394_v29 = vpop.f32.mrf.mxu2  ;;  %v1407_v48 = vpop.f32.mrf.mxu3 }
 0x160   :  { %v1395_v46 = vadd.f32 %v1394_v29, %v1382_v33  ;;  %v1370_v43 = vpop.f32.mrf.mxu0  ;;  %v1383_v32 = vpop.f32.mrf.mxu1 }
 0x162   :  { %v1408_v15 = vadd.f32 %v1407_v48, %v1395_v46 }
 0x164   :  { %v1411_v35 = vsel %vm20_vm3, %v1408_v15, -1e+30 }
 0x165   :  { %v1412_v40 = vsel %vm48_vm0, %v1411_v35, -inf }
 0x166   :  { %1413 = vmax.xlane.f32.xlu1 %v1412_v40 }
 0x167   :  { %v1396_v39 = vpop.f32.mrf.mxu2  ;;  %v1409_v47 = vpop.f32.mrf.mxu3 }
 0x16e   :  { %749 = vadd.xlane.f32.xlu1 %v748_v42  ;;  %v3221_v42 = vld [vmem:[%s4337_s2 + $0x38] sm:$0xff] }
 0x1d9   :  { %v1414_v34 = vpop.xlane.xlu1 %1413 }
 0x1da   :  { %v1415_v37 = vsub.f32 %v1411_v35, %v1414_v34 }
 0x1dc   :  { %v1416_v26 = vmul.f32 1.442695, %v1415_v37  ;;  %v3237_v37 = vld [vmem:[%s4337_s2 + $0xb8] sm:$0xff] }
 0x1de   :  { %3290 = vpow2.f32 %v1416_v26  ;;  %v3245_v26 = vld [vmem:[%s4337_s2 + $0xf8] sm:$0xff] }
 0x1e1   :  { %v750_v30 = vpop.xlane.xlu1 %749 }
 0x1e2   :  { %3292 = vlog2.f32 %v750_v30  ;;  %v3220_v30 = vld [vmem:[%s4337_s2 + $0x30] sm:$0xff] }
 0x1e4   :  { %v3291_v31 = vpop.eup %3290 }
 0x1e5   :  { %v1418_v12 = vsel %vm48_vm0, %v3291_v31, 0.0  ;;  %v3228_v31 = vld [vmem:[%s4337_s2 + $0x70] sm:$0xff] }
 0x1e6   :  { %1419 = vadd.xlane.f32.xlu2 %v1418_v12  ;;  %v3236_v12 = vld [vmem:[%s4337_s2 + $0xb0] sm:$0xff] }
 0x1e8   :  { %v3293_v49 = vpop.eup %3292 }
 0x1e9   :  { %v752_v13 = vmul.f32 0.6931472, %v3293_v49  ;;  %v3244_v49 = vld [vmem:[%s4337_s2 + $0xf0] sm:$0xff] }
 0x1eb   :  { %v753_v44 = vadd.f32 %v752_v13, %v744_v25  ;;  %v3219_v13 = vld [vmem:[%s4337_s2 + $0x28] sm:$0xff] }
 0x1ed   :  { %v754_v50 = vsub.f32 %v3997_v41, %v753_v44  ;;  %v3227_v44 = vld [vmem:[%s4337_s2 + $0x68] sm:$0xff] }
 0x1ef   :  { %755 = vst [vmem:[#allocation3] sm:$0x3] %v754_v50  ;;  %v3235_v50 = vld [vmem:[%s4337_s2 + $0xa8] sm:$0xff] }
 0x1f6   :  { %v1427_v54 = vld [vmem:[#allocation3] sm:$0x3] }
 0x1f7   :  { %v1428_v56 = vmul.f32 1.442695, %v1427_v54  ;;  %v3234_v54 = vld [vmem:[%s4337_s2 + $0xa0] sm:$0xff] }
 0x259   :  { %v1420_v51 = vpop.xlane.xlu2 %1419 }
 0x25a   :  { %3294 = vlog2.f32 %v1420_v51  ;;  %v3243_v51 = vld [vmem:[%s4337_s2 + $0xe8] sm:$0xff] }
 0x25b   :  { %3296 = vpow2.f32 %v1428_v56  ;;  %v3217_v56 = vld [vmem:[%s4337_s2 + $0x18] sm:$0xff] }
 0x260   :  { %v3295_v52 = vpop.eup %3294 }
 0x261   :  { %v1422_v53 = vmul.f32 0.6931472, %v3295_v52  ;;  %v3297_v59 = vpop.eup %3296  ;;  %v3218_v52 = vld [vmem:[%s4337_s2 + $0x20] sm:$0xff] }
 0x263   :  { %v1423_v55 = vadd.f32 %v1422_v53, %v1414_v34  ;;  %v3229_v34 = vld [vmem:[%s4337_s2 + $0x78] sm:$0xff]  ;;  %v3226_v53 = vld [vmem:[%s4337_s2 + $0x60] sm:$0xff] }
 0x265   :  { %v1424_v57 = vsub.f32 %v1411_v35, %v1423_v55  ;;  %v3242_v55 = vld [vmem:[%s4337_s2 + $0xe0] sm:$0xff] }
 0x267   :  { %v1425_v58 = vmul.f32 1.442695, %v1424_v57  ;;  %v3225_v57 = vld [vmem:[%s4337_s2 + $0x58] sm:$0xff] }
 0x269   :  { %3298 = vpow2.f32 %v1425_v58  ;;  %v3233_v58 = vld [vmem:[%s4337_s2 + $0x98] sm:$0xff] }
 0x26f   :  { %v3299_v60 = vpop.eup %3298 }
 0x270   :  { %v1430_v61 = vsub.f32 %v3299_v60, %v3297_v59  ;;  %v3241_v59 = vld [vmem:[%s4337_s2 + $0xd8] sm:$0xff]  ;;  %v3216_v60 = vld [vmem:[%s4337_s2 + $0x10] sm:$0xff] }
 0x272   :  { %v1431_v62 = vmul.f32 5.0, %v1430_v61  ;;  %v3224_v61 = vld [vmem:[%s4337_s2 + $0x50] sm:$0xff] }
 0x274   :  { %v1432_v63 = vpack.c.bf16 %v1431_v62, %v1431_v62  ;;  %v3232_v62 = vld [vmem:[%s4337_s2 + $0x90] sm:$0xff] }
 0x276   :  { %1441 = vmatmul.bf16.vlgmr.msra.gmra.mxu0 %v1432_v63  ;;  %1454 = vmatmul.bf16.vlgmr.msra.gmra.mxu1 %v1432_v63 }
 0x277   :  { %1467 = vmatmul.bf16.vlgmr.msra.gmra.mxu2 %v1432_v63  ;;  %1480 = vmatmul.bf16.vlgmr.msra.gmra.mxu3 %v1432_v63 }
 0x278   :  { %2159 = vmatpush.bf16.msra.mxu0 %v3221_v42  ;;  %2172 = vmatpush.bf16.msra.mxu1 %v3229_v34  ;;  %v3249_v34 = vld [vmem:[%s4337_s2 + $0x118] sm:$0xff] }
 0x279   :  { %2185 = vmatpush.bf16.msra.mxu2 %v3237_v37  ;;  %2198 = vmatpush.bf16.msra.mxu3 %v3245_v26  ;;  %v3257_v37 = vld [vmem:[%s4337_s2 + $0x158] sm:$0xff] }
 0x27a   :  { %v3265_v26 = vld [vmem:[%s4337_s2 + $0x198] sm:$0xff] }
 0x27c   :  { %2160 = vmatpush.bf16.msra.mxu0 %v3220_v30  ;;  %2173 = vmatpush.bf16.msra.mxu1 %v3228_v31  ;;  %v3273_v31 = vld [vmem:[%s4337_s2 + $0x1d8] sm:$0xff] }
 0x27d   :  { %2186 = vmatpush.bf16.msra.mxu2 %v3236_v12  ;;  %2199 = vmatpush.bf16.msra.mxu3 %v3244_v49 }
 0x280   :  { %2161 = vmatpush.bf16.msra.mxu0 %v3219_v13  ;;  %2174 = vmatpush.bf16.msra.mxu1 %v3227_v44  ;;  %v3248_v13 = vld [vmem:[%s4337_s2 + $0x110] sm:$0xff] }
 0x281   :  { %2187 = vmatpush.bf16.msra.mxu2 %v3235_v50  ;;  %2200 = vmatpush.bf16.msra.mxu3 %v3243_v51  ;;  %v3256_v44 = vld [vmem:[%s4337_s2 + $0x150] sm:$0xff] }
 0x282   :  { %v3264_v51 = vld [vmem:[%s4337_s2 + $0x190] sm:$0xff] }
 0x284   :  { %2162 = vmatpush.bf16.msra.mxu0 %v3218_v52  ;;  %2175 = vmatpush.bf16.msra.mxu1 %v3226_v53  ;;  %v3272_v52 = vld [vmem:[%s4337_s2 + $0x1d0] sm:$0xff]  ;;  %v3247_v53 = vld [vmem:[%s4337_s2 + $0x108] sm:$0xff] }
 0x285   :  { %2188 = vmatpush.bf16.msra.mxu2 %v3234_v54  ;;  %2201 = vmatpush.bf16.msra.mxu3 %v3242_v55  ;;  %v3255_v54 = vld [vmem:[%s4337_s2 + $0x148] sm:$0xff] }
 0x286   :  { %1493 = vmatmul.bf16.vlgmr.msrb.gmra.mxu0 %v1432_v63  ;;  %1506 = vmatmul.bf16.vlgmr.msrb.gmra.mxu1 %v1432_v63  ;;  %v3263_v55 = vld [vmem:[%s4337_s2 + $0x188] sm:$0xff] }
 0x287   :  { %1519 = vmatmul.bf16.vlgmr.msrb.gmra.mxu2 %v1432_v63  ;;  %1532 = vmatmul.bf16.vlgmr.msrb.gmra.mxu3 %v1432_v63  ;;  %v3240_v63 = vld [vmem:[%s4337_s2 + $0xd0] sm:$0xff] }
 0x288   :  { %2163 = vmatpush.bf16.msra.mxu0 %v3217_v56  ;;  %2176 = vmatpush.bf16.msra.mxu1 %v3225_v57  ;;  %v3271_v56 = vld [vmem:[%s4337_s2 + $0x1c8] sm:$0xff]  ;;  %v3246_v57 = vld [vmem:[%s4337_s2 + $0x100] sm:$0xff] }
 0x289   :  { %2189 = vmatpush.bf16.msra.mxu2 %v3233_v58  ;;  %2202 = vmatpush.bf16.msra.mxu3 %v3241_v59  ;;  %v3254_v58 = vld [vmem:[%s4337_s2 + $0x140] sm:$0xff] }
 0x28c   :  { %2164 = vmatpush.bf16.msra.mxu0 %v3216_v60  ;;  %2177 = vmatpush.bf16.msra.mxu1 %v3224_v61  ;;  %v3262_v60 = vld [vmem:[%s4337_s2 + $0x180] sm:$0xff] }
 0x28d   :  { %2190 = vmatpush.bf16.msra.mxu2 %v3232_v62  ;;  %2203 = vmatpush.bf16.msra.mxu3 %v3240_v63  ;;  %v3270_v61 = vld [vmem:[%s4337_s2 + $0x1c0] sm:$0xff] }
 0x2f3   :  { %v4075_v41 = vpop.f32.mrf.mxu0  ;;  %v4077_v0 = vpop.f32.mrf.mxu1 }
 0x2f4   :  { %v1537_v1 = vmul.f32 %v4075_v41, %v4075_v41  ;;  %v1538_v2 = vmul.f32 %v4077_v0, %v4077_v0 }
 0x2f6   :  { %v1545_v8 = vsel %vm48_vm0, %v1537_v1, 0.0  ;;  %v1546_v9 = vsel %vm48_vm0, %v1538_v2, 0.0  ;;  %v3215_v1 = vld [vmem:[%s4337_s2 + $0x8] sm:$0xff] }
 0x2f7   :  { %v1547_v11 = vadd.f32 %v1546_v9, %v1545_v8  ;;  %v3223_v2 = vld [vmem:[%s4337_s2 + $0x48] sm:$0xff]  ;;  %2165 = vmatpush.bf16.msra.mxu0 %v3215_v1  ;;  %v3214_v8 = vld [vmem:[%s4337_s2] sm:$0xff] }
 0x2f8   :  { %2178 = vmatpush.bf16.msra.mxu1 %v3223_v2  ;;  %v3222_v9 = vld [vmem:[%s4337_s2 + $0x40] sm:$0xff] }
 0x2fa   :  { %v4083_v3 = vpop.f32.mrf.mxu2  ;;  %v4085_v4 = vpop.f32.mrf.mxu3 }
 0x2fb   :  { %v1539_v5 = vmul.f32 %v4083_v3, %v4083_v3  ;;  %v1444_v6 = vpop.f32.mrf.mxu0  ;;  %v1457_v7 = vpop.f32.mrf.mxu1  ;;  %v1540_v14 = vmul.f32 %v4085_v4, %v4085_v4  ;;  %2166 = vmatpush.bf16.msra.mxu0 %v3214_v8 }
 0x2fc   :  { %v3239_v6 = vld [vmem:[%s4337_s2 + $0xc8] sm:$0xff]  ;;  %2179 = vmatpush.bf16.msra.mxu1 %v3222_v9 }
 0x2fd   :  { %v1548_v10 = vsel %vm48_vm0, %v1539_v5, 0.0  ;;  %v1550_v22 = vsel %vm48_vm0, %v1540_v14, 0.0  ;;  %v3231_v5 = vld [vmem:[%s4337_s2 + $0x88] sm:$0xff]  ;;  %2204 = vmatpush.bf16.msra.mxu3 %v3239_v6  ;;  %v3253_v14 = vld [vmem:[%s4337_s2 + $0x138] sm:$0xff] }
 0x2fe   :  { %v1549_v16 = vadd.f32 %v1548_v10, %v1547_v11  ;;  %2191 = vmatpush.bf16.msra.mxu2 %v3231_v5  ;;  %v3230_v10 = vld [vmem:[%s4337_s2 + $0x80] sm:$0xff] }
 0x2ff   :  { %v3238_v11 = vld [vmem:[%s4337_s2 + $0xc0] sm:$0xff]  ;;  %2211 = vmatpush.bf16.msrb.mxu0 %v3253_v14 }
 0x300   :  { %v1551_v23 = vadd.f32 %v1550_v22, %v1549_v16  ;;  %v3261_v16 = vld [vmem:[%s4337_s2 + $0x178] sm:$0xff]  ;;  %v3260_v22 = vld [vmem:[%s4337_s2 + $0x170] sm:$0xff] }
 0x301   :  { %2205 = vmatpush.bf16.msra.mxu3 %v3238_v11  ;;  %2224 = vmatpush.bf16.msrb.mxu1 %v3261_v16 }
 0x302   :  { %v1470_v17 = vpop.f32.mrf.mxu2  ;;  %v1483_v18 = vpop.f32.mrf.mxu3  ;;  %2192 = vmatpush.bf16.msra.mxu2 %v3230_v10 }
 0x303   :  { %v4094_v19 = vpop.f32.mrf.mxu0  ;;  %v4096_v20 = vpop.f32.mrf.mxu1  ;;  %v3269_v17 = vld [vmem:[%s4337_s2 + $0x1b8] sm:$0xff] }
 0x304   :  { %v1541_v21 = vmul.f32 %v4094_v19, %v4094_v19  ;;  %v1542_v25 = vmul.f32 %v4096_v20, %v4096_v20  ;;  %v3277_v18 = vld [vmem:[%s4337_s2 + $0x1f8] sm:$0xff] }
 0x305   :  { %2250 = vmatpush.bf16.msrb.mxu3 %v3277_v18  ;;  %2225 = vmatpush.bf16.msrb.mxu1 %v3260_v22 }
 0x306   :  { %v1552_v24 = vsel %vm48_vm0, %v1541_v21, 0.0  ;;  %v1554_v29 = vsel %vm48_vm0, %v1542_v25, 0.0  ;;  %v3252_v21 = vld [vmem:[%s4337_s2 + $0x130] sm:$0xff]  ;;  %2237 = vmatpush.bf16.msrb.mxu2 %v3269_v17 }
 0x307   :  { %v1553_v27 = vadd.f32 %v1552_v24, %v1551_v23  ;;  %v3268_v23 = vld [vmem:[%s4337_s2 + $0x1b0] sm:$0xff]  ;;  %2212 = vmatpush.bf16.msrb.mxu0 %v3252_v21 }
 0x308   :  { %v3276_v24 = vld [vmem:[%s4337_s2 + $0x1f0] sm:$0xff] }
 0x309   :  { %v1555_v32 = vadd.f32 %v1554_v29, %v1553_v27  ;;  %v3251_v29 = vld [vmem:[%s4337_s2 + $0x128] sm:$0xff]  ;;  %2251 = vmatpush.bf16.msrb.mxu3 %v3276_v24 }
 0x30a   :  { %v4104_v28 = vpop.f32.mrf.mxu2  ;;  %v4106_v33 = vpop.f32.mrf.mxu3  ;;  %2238 = vmatpush.bf16.msrb.mxu2 %v3268_v23  ;;  %v4404_v17 = vld [vmem:[#allocation7_spill] sm:$0xff] }
 0x30b   :  { %v1543_v48 = vmul.f32 %v4104_v28, %v4104_v28  ;;  %v1544_v38 = vmul.f32 %v4106_v33, %v4106_v33  ;;  %v1496_v46 = vpop.f32.mrf.mxu0  ;;  %v1509_v43 = vpop.f32.mrf.mxu1  ;;  %2213 = vmatpush.bf16.msrb.mxu0 %v3251_v29 }
 0x30c   :  { %v3267_v46 = vld [vmem:[%s4337_s2 + $0x1a8] sm:$0xff] }
 0x30d   :  { %v1556_v15 = vsel %vm48_vm0, %v1543_v48, 0.0  ;;  %v1558_v40 = vsel %vm48_vm0, %v1544_v38, 0.0  ;;  %v3259_v48 = vld [vmem:[%s4337_s2 + $0x168] sm:$0xff] }
 0x30e   :  { %v1557_v35 = vadd.f32 %v1556_v15, %v1555_v32  ;;  %v3275_v43 = vld [vmem:[%s4337_s2 + $0x1e8] sm:$0xff]  ;;  %2226 = vmatpush.bf16.msrb.mxu1 %v3259_v48  ;;  %v3250_v15 = vld [vmem:[%s4337_s2 + $0x120] sm:$0xff]  ;;  %2239 = vmatpush.bf16.msrb.mxu2 %v3267_v46 }
 0x30f   :  { %2252 = vmatpush.bf16.msrb.mxu3 %v3275_v43  ;;  %2214 = vmatpush.bf16.msrb.mxu0 %v3250_v15 }
 0x310   :  { %v1559_v39 = vadd.f32 %v1558_v40, %v1557_v35  ;;  %v3258_v35 = vld [vmem:[%s4337_s2 + $0x160] sm:$0xff] }
 0x312   :  { %v1522_v47 = vpop.f32.mrf.mxu2  ;;  %v1535_v36 = vpop.f32.mrf.mxu3  ;;  %1560 = vadd.xlane.f32.xlu2 %v1559_v39  ;;  %v3266_v39 = vld [vmem:[%s4337_s2 + $0x1a0] sm:$0xff]  ;;  %2227 = vmatpush.bf16.msrb.mxu1 %v3258_v35 }
 0x313   :  { %v3274_v47 = vld [vmem:[%s4337_s2 + $0x1e0] sm:$0xff]  ;;  %2240 = vmatpush.bf16.msrb.mxu2 %v3266_v39  ;;  %2215 = vmatpush.bf16.msrb.mxu0 %v3249_v34 }
 0x314   :  { %2253 = vmatpush.bf16.msrb.mxu3 %v3274_v47  ;;  %v3283_v34 = vld [vmem:[%s4338_s3] ss:$0 sm:$0xff]  ;;  %s3340_s3 = smov [#allocation4]  }
 0x315   :  { %s2307_s21 = sshll.u32 %s3340_s3, 4  ;;  %s2308_s21 = int_to_ptr.vmem [resolvable:$true] %s2307_s21 }
 0x316   :  { %2228 = vmatpush.bf16.msrb.mxu1 %v3257_v37 }
 0x317   :  { %2241 = vmatpush.bf16.msrb.mxu2 %v3265_v26  ;;  %2216 = vmatpush.bf16.msrb.mxu0 %v3248_v13 }
 0x318   :  { %2254 = vmatpush.bf16.msrb.mxu3 %v3273_v31 }
 0x31a   :  { %2229 = vmatpush.bf16.msrb.mxu1 %v3256_v44 }
 0x31b   :  { %2242 = vmatpush.bf16.msrb.mxu2 %v3264_v51  ;;  %2217 = vmatpush.bf16.msrb.mxu0 %v3247_v53 }
 0x31c   :  { %2255 = vmatpush.bf16.msrb.mxu3 %v3272_v52 }
 0x31e   :  { %2230 = vmatpush.bf16.msrb.mxu1 %v3255_v54 }
 0x31f   :  { %2243 = vmatpush.bf16.msrb.mxu2 %v3263_v55  ;;  %2218 = vmatpush.bf16.msrb.mxu0 %v3246_v57 }
 0x320   :  { %2256 = vmatpush.bf16.msrb.mxu3 %v3271_v56 }
 0x322   :  { %2231 = vmatpush.bf16.msrb.mxu1 %v3254_v58 }
 0x323   :  { %2244 = vmatpush.bf16.msrb.mxu2 %v3262_v60 }
 0x324   :  { %2257 = vmatpush.bf16.msrb.mxu3 %v3270_v61 }
 0x385   :  { %v1561_v7 = vpop.xlane.xlu2 %1560 }
 0x386   :  { %3300 = vrsqrt.f32 %v1561_v7  ;;  %vm1569_vm4 = vcmp.eq.f32.partialorder %v1561_v7, inf  ;;  %v1572_v30 = vand.u32 2147483648, %v1561_v7  ;;  %vm1571_vm5 = vcmp.eq.f32.partialorder %v1561_v7, 0.0 }
 0x38c   :  { %v3301_v25 = vpop.eup %3300 }
 0x38d   :  { %v1563_v27 = vmul.f32 %v3301_v25, %v1561_v7 }
 0x38f   :  { %v1564_v38 = vmul.f32 %v3301_v25, %v1563_v27 }
 0x391   :  { %v1565_v32 = vmul.f32 0.5, %v1564_v38 }
 0x393   :  { %v1566_v40 = vsub.f32 1.5, %v1565_v32 }
 0x395   :  { %v1567_v36 = vmul.f32 %v3301_v25, %v1566_v40 }
 0x397   :  { %v1568_v42 = vmul.f32 %v1567_v36, %v1561_v7 }
 0x399   :  { %v1570_v12 = vsel %vm1569_vm4, %v1561_v7, %v1568_v42 }
 0x39a   :  { %v1573_v49 = vsel %vm1571_vm5, %v1572_v30, %v1570_v12 }
 0x39b   :  { %v1574_v50 = vadd.f32 1e-07, %v1573_v49 }
 0x39d   :  { %3302 = vrcp.f32 %v1574_v50 }
 0x3a3   :  { %v3303_v59 = vpop.eup %3302 }
 0x3a4   :  { %v1577_v62 = vmul.f32 %v3303_v59, %v4077_v0  ;;  %v1578_v63 = vmul.f32 %v3303_v59, %v4083_v3  ;;  %v1579_v1 = vmul.f32 %v3303_v59, %v4085_v4  ;;  %v1581_v2 = vmul.f32 %v3303_v59, %v4096_v20 }
 0x3a5   :  { %v1582_v5 = vmul.f32 %v3303_v59, %v4104_v28  ;;  %v1583_v6 = vmul.f32 %v3303_v59, %v4106_v33  ;;  %v1576_v7 = vmul.f32 %v3303_v59, %v4075_v41  ;;  %v1580_v0 = vmul.f32 %v3303_v59, %v4094_v19  ;;  %v4405_v19 = vld [vmem:[#allocation8_spill] sm:$0xff] }
 0x3a6   :  { %v1592_v8 = vrot.slane %v1577_v62, 6  ;;  %v1593_v9 = vrot.slane %v1578_v63, 4  ;;  %v1594_v10 = vrot.slane %v1579_v1, 2  ;;  %v1595_v11 = vrot.slane %v1581_v2, 6 }
 0x3a7   :  { %v1596_v3 = vrot.slane %v1582_v5, 4  ;;  %v1597_v14 = vrot.slane %v1583_v6, 2 }
 0x3a8   :  { %v1598_v4 = vsel %vm48_vm0, %v1576_v7, %v1592_v8  ;;  %v1600_v20 = vsel %vm1599_vm6, %v1593_v9, %v1594_v10  ;;  %v1603_v41 = vsel %vm48_vm0, %v1580_v0, %v1595_v11  ;;  %v2277_v0 = vld [vmem:[#allocation3] sm:$0x3] }
 0x3a9   :  { %v1602_v28 = vsel %vm1601_vm7, %v1598_v4, %v1600_v20  ;;  %v1604_v33 = vsel %vm1599_vm6, %v1596_v3, %v1597_v14  ;;  %v2278_v11 = vmul.f32 1.442695, %v2277_v0 }
 0x3aa   :  { %v1605_v16 = vsel %vm1601_vm7, %v1603_v41, %v1604_v33  ;;  %v1612_v18 = vadd.f32 %v1602_v28, %v4404_v17 }
 0x3ab   :  { %v1613_v21 = vadd.f32 %v1605_v16, %v4405_v19  ;;  %v3339_v16 = vmov 2.0  }
 0x3ac   :  { %1616 = vst [vmem:[#allocation1] ss:$4 sm:$0xff] %v1612_v18 }
 0x3ad   :  { %1618 = vst [vmem:[#allocation1 + $0x20] ss:$4 sm:$0xff] %v1613_v21 }
 0x3b3   :  { %v1619_v22 = vld.sshfl [vmem:[#allocation1] sm:$0xff pattern:$0x73625140]  ;;  %v1620_v23 = vld.sshfl [vmem:[#allocation1 + $0x8] sm:$0xff pattern:$0x73625140] }
 0x3b4   :  { %v1635_v24 = vpack.c.bf16 %v1619_v22, %v1619_v22  ;;  %v1636_v25 = vpack.c.bf16 %v1620_v23, %v1620_v23  ;;  %v1621_v27 = vld.sshfl [vmem:[#allocation1 + $0x10] sm:$0xff pattern:$0x73625140]  ;;  %v1622_v29 = vld.sshfl [vmem:[#allocation1 + $0x18] sm:$0xff pattern:$0x73625140] }
 0x3b5   :  { %v1637_v48 = vpack.c.bf16 %v1621_v27, %v1621_v27  ;;  %v1638_v38 = vpack.c.bf16 %v1622_v29, %v1622_v29  ;;  %v1623_v46 = vld.sshfl [vmem:[#allocation1 + $0x20] sm:$0xff pattern:$0x73625140]  ;;  %v1624_v43 = vld.sshfl [vmem:[#allocation1 + $0x28] sm:$0xff pattern:$0x73625140] }
 0x3b6   :  { %2167 = vmatmul.bf16.vlgmr.msra.gmra.mxu0 %v1635_v24  ;;  %2180 = vmatmul.bf16.vlgmr.msra.gmra.mxu1 %v1636_v25  ;;  %v1625_v32 = vld.sshfl [vmem:[#allocation1 + $0x30] sm:$0xff pattern:$0x73625140]  ;;  %v1626_v15 = vld.sshfl [vmem:[#allocation1 + $0x38] sm:$0xff pattern:$0x73625140]  ;;  %v1639_v35 = vpack.c.bf16 %v1623_v46, %v1623_v46  ;;  %v1640_v40 = vpack.c.bf16 %v1624_v43, %v1624_v43 }
 0x3b7   :  { %2193 = vmatmul.bf16.vlgmr.msra.gmra.mxu2 %v1637_v48  ;;  %2206 = vmatmul.bf16.vlgmr.msra.gmra.mxu3 %v1638_v38  ;;  %v1641_v39 = vpack.c.bf16 %v1625_v32, %v1625_v32  ;;  %v1642_v47 = vpack.c.bf16 %v1626_v15, %v1626_v15 }
 0x3c6   :  { %2219 = vmatmul.bf16.vlgmr.msrb.gmra.mxu0 %v1639_v35  ;;  %2232 = vmatmul.bf16.vlgmr.msrb.gmra.mxu1 %v1640_v40 }
 0x3c7   :  { %2245 = vmatmul.bf16.vlgmr.msrb.gmra.mxu2 %v1641_v39  ;;  %2258 = vmatmul.bf16.vlgmr.msrb.gmra.mxu3 %v1642_v47 }
 0x433   :  { %v2168_v36 = vpop.f32.mrf.mxu0  ;;  %v2181_v42 = vpop.f32.mrf.mxu1 }
 0x434   :  { %v2169_v37 = vadd.f32 %v3283_v34, %v2168_v36 }
 0x436   :  { %v2182_v49 = vadd.f32 %v2181_v42, %v2169_v37 }
 0x43a   :  { %v2194_v26 = vpop.f32.mrf.mxu2  ;;  %v2207_v30 = vpop.f32.mrf.mxu3 }
 0x43b   :  { %v2170_v31 = vpop.f32.mrf.mxu0  ;;  %v2183_v12 = vpop.f32.mrf.mxu1  ;;  %v2195_v13 = vadd.f32 %v2194_v26, %v2182_v49 }
 0x43d   :  { %v2208_v51 = vadd.f32 %v2207_v30, %v2195_v13 }
 0x442   :  { %v2196_v44 = vpop.f32.mrf.mxu2  ;;  %v2209_v50 = vpop.f32.mrf.mxu3 }
 0x443   :  { %v2220_v52 = vpop.f32.mrf.mxu0  ;;  %v2233_v53 = vpop.f32.mrf.mxu1 }
 0x444   :  { %v2221_v54 = vadd.f32 %v2220_v52, %v2208_v51 }
 0x446   :  { %v2234_v55 = vadd.f32 %v2233_v53, %v2221_v54 }
 0x44a   :  { %v2246_v56 = vpop.f32.mrf.mxu2  ;;  %v2259_v57 = vpop.f32.mrf.mxu3 }
 0x44b   :  { %v2247_v58 = vadd.f32 %v2246_v56, %v2234_v55  ;;  %v2222_v59 = vpop.f32.mrf.mxu0  ;;  %v2235_v60 = vpop.f32.mrf.mxu1 }
 0x44d   :  { %v2260_v61 = vadd.f32 %v2259_v57, %v2247_v58 }
 0x44f   :  { %v2263_v62 = vsel %vm20_vm3, %v2260_v61, -1e+30 }
 0x450   :  { %v2264_v63 = vsel %vm48_vm0, %v2263_v62, -inf }
 0x451   :  { %2265 = vmax.xlane.f32.xlu0 %v2264_v63 }
 0x452   :  { %v2248_v1 = vpop.f32.mrf.mxu2  ;;  %v2261_v2 = vpop.f32.mrf.mxu3 }
 0x4c4   :  { %v2266_v5 = vpop.xlane.xlu0 %2265 }
 0x4c5   :  { %v2267_v6 = vsub.f32 %v2263_v62, %v2266_v5 }
 0x4c7   :  { %v2268_v7 = vmul.f32 1.442695, %v2267_v6 }
 0x4c9   :  { %3304 = vpow2.f32 %v2268_v7 }
 0x4cf   :  { %v3305_v8 = vpop.eup %3304 }
 0x4d0   :  { %v2270_v9 = vsel %vm48_vm0, %v3305_v8, 0.0 }
 0x4d1   :  { %2271 = vadd.xlane.f32.xlu1 %v2270_v9 }
 0x544   :  { %v2272_v10 = vpop.xlane.xlu1 %2271 }
 0x545   :  { %3306 = vlog2.f32 %v2272_v10 }
 0x546   :  { %3308 = vpow2.f32 %v2278_v11 }
 0x547   :  { %3310 = vrcp.f32 %v3339_v16 }
 0x54b   :  { %v3307_v3 = vpop.eup %3306 }
 0x54c   :  { %v2274_v45 = vmul.f32 0.6931472, %v3307_v3  ;;  %v3309_v28 = vpop.eup %3308 }
 0x54d   :  { %v3311_v17 = vpop.eup %3310 }
 0x54e   :  { %v2275_v14 = vadd.f32 %v2274_v45, %v2266_v5  ;;  %v2293_v18 = vmul.f32 2.0, %v3311_v17  ;;  %vm2297_vm8 = vweird.f32 %v3311_v17 }
 0x550   :  { %v2276_v4 = vsub.f32 %v2263_v62, %v2275_v14  ;;  %v2294_v19 = vsub.f32 1.0, %v2293_v18 }
 0x552   :  { %v2280_v20 = vsub.f32 %v2277_v0, %v2276_v4  ;;  %v2295_v24 = vmul.f32 %v3311_v17, %v2294_v19 }
 0x554   :  { %v2281_v41 = vmul.f32 %v3309_v28, %v2280_v20  ;;  %v2296_v29 = vadd.f32 %v3311_v17, %v2295_v24 }
 0x556   :  { %v2282_v33 = vsel %vm48_vm0, %v2281_v41, 0.0  ;;  %v2298_v46 = vsel %vm2297_vm8, %v3311_v17, %v2296_v29 }
 0x557   :  { %2283 = vadd.xlane.f32.xlu2 %v2282_v33 }
 0x5ca   :  { %v2284_v21 = vpop.xlane.xlu2 %2283 }
 0x5cb   :  { %v2285_v22 = vsel %vm48_vm0, %v2284_v21, 0.0 }
 0x5cc   :  { %v2286_v23 = vrot.slane %v2285_v22, 4 }
 0x5ce   :  { %v2287_v25 = vadd.f32 %v2286_v23, %v2285_v22 }
 0x5d0   :  { %v2288_v27 = vrot.slane %v2287_v25, 2 }
 0x5d2   :  { %v2289_v48 = vadd.f32 %v2288_v27, %v2287_v25 }
 0x5d4   :  { %v2290_v38 = vrot.slane %v2289_v48, 1 }
 0x5d6   :  { %v2291_v43 = vadd.f32 %v2290_v38, %v2289_v48 }
 0x5d8   :  { %v2299_v32 = vmul.f32 %v2298_v46, %v2291_v43 }
 0x5da   :  { %2301 = vst.msk [vmem:[#allocation4] sm:$0x1] %vm2300_vm9, %v2299_v32 }
 0x5db   :  { %2312 = dma.vmem_to_hbm [thread:$0]  %s2308_s21, 16, %s2310_s24, [#allocation5]  }
 0x5dc   :  { %3336 = dma.done.wait [#allocation5], 16  }
 0x5dd   :  { %3337 = vsyncadd [#allocation5], 4294967280 }
 0x5de   :  { %2317 = vsyncpa [#allocation5], 1 }

</bundles_post_ra>
